<compile_context>
chip_gen: v5e
topology: v5e:2x2
jax: 0.10.0
libtpu: 0.0.40
codegen_flags: <defaults>
</compile_context>

<pallas_src>
import jax
import jax.numpy as jnp
import numpy as np
from jax.experimental import pallas as pl
from jax.experimental.pallas import tpu as pltpu


def _make_kernel(seq: int, levels: int, hidden: int):
    """Single-shot recurrence over one batch group (all weights/state in VMEM)."""
    H = hidden

    def lstm_cell(gates, c_prev):
        # i/f/o gate columns of `gates` were pre-scaled by 0.5 in the wrapper,
        # so sigmoid(x) == 0.5*(1 + tanh(x/2)) comes from the SAME full-width
        # tanh push that also yields the g-gate activation: 2 serialized EUP
        # pushes per cell (this tanh + tanh(c_new)) instead of ~4.
        t_all = jnp.tanh(gates)                          # (bb, 4H), 1 EUP push
        # Static lane slices of the activated gates (32-lane extracts); the
        # remaining combines are pure VPU work.
        i_g = 0.5 * (1.0 + t_all[:, 0 * H:1 * H])
        f_g = 0.5 * (1.0 + t_all[:, 1 * H:2 * H])
        g_g = t_all[:, 2 * H:3 * H]                      # g columns unscaled
        o_g = 0.5 * (1.0 + t_all[:, 3 * H:4 * H])
        c_new = f_g * c_prev + i_g * g_g
        h_new = o_g * jnp.tanh(c_new)                    # 2nd EUP push
        return h_new, c_new

    def kernel(*refs):
        # inputs : xw0 (seq,bb,4H)  -- hoisted layer-0 input projection
        #                             (bias folded, i/f/o columns pre-halved)
        #          h0, c0 (levels,bb,H)
        #          w_hh0 (H,4H)                          (i/f/o cols pre-halved)
        #          [w_ih_l (H,4H), w_hh_l (H,4H), b_l (1,4H)]  for l=1..levels-1
        # output : out (bb, seq*H)  -- top-layer hiddens, lane-dense store
        xw0_ref, h0_ref, c0_ref, whh0_ref = refs[:4]
        upper = refs[4:4 + 3 * (levels - 1)]
        out_ref = refs[4 + 3 * (levels - 1)]

        h = [h0_ref[l] for l in range(levels)]
        c = [c0_ref[l] for l in range(levels)]

        # seq is short: static unroll keeps h/c in vregs. Weights are re-read
        # from VMEM refs per iteration (cheap vld, off the serial chain) so the
        # register allocator is free to drop them under pressure.
        # TODO(synk): switch the time loop to lax.fori_loop with h/c in VMEM
        # scratch once seq is no longer ~8 (static unroll does not bound live
        # ranges).
        for t in range(seq):
            # Layer 0: only the recurrent matmul sits on the serial path.
            gates = xw0_ref[t] + jnp.dot(
                h[0], whh0_ref[...], preferred_element_type=jnp.float32)
            h[0], c[0] = lstm_cell(gates, c[0])
            xt = h[0]
            # Layers 1..levels-1: two back-to-back MXU dots (no lane concat).
            for l in range(1, levels):
                w_ih = upper[3 * (l - 1)][...]
                w_hh = upper[3 * (l - 1) + 1][...]
                b_l = upper[3 * (l - 1) + 2][...]
                gates = (jnp.dot(xt, w_ih, preferred_element_type=jnp.float32)
                         + jnp.dot(h[l], w_hh, preferred_element_type=jnp.float32)
                         + b_l)
                h[l], c[l] = lstm_cell(gates, c[l])
                xt = h[l]
            # Store the top-layer hidden at its static lane offset (VMEM store,
            # off the recurrence critical path).  The final HBM write-back is a
            # single lane-dense (bb, seq*H) DMA.
            out_ref[:, t * H:(t + 1) * H] = xt.astype(out_ref.dtype)

    return kernel


def sequence_forward_pallas(x, h0, c0, params):
    """x: (seq, batch, in); h0/c0: (levels, batch, H). Returns squeeze of (seq, batch)."""
    seq, batch, in_size = x.shape
    levels, _, H = h0.shape

    # Scale vector that halves the i/f/o gate columns (sigmoid-via-tanh trick);
    # the g columns stay at 1.0.
    scale = jnp.concatenate([
        jnp.full((2 * H,), 0.5, jnp.float32),   # i, f
        jnp.ones((H,), jnp.float32),            # g
        jnp.full((H,), 0.5, jnp.float32),       # o
    ])

    # Hoist the time-independent layer-0 input projection (and its folded bias)
    # out of the recurrence: one big matmul instead of `seq` tiny matmuls on
    # the sequential critical path.  Pre-halve its i/f/o columns.
    xw0 = (jnp.einsum("tbi,ig->tbg", x, params["w_ih"][0]) + params["b"][0])
    xw0 = (xw0 * scale).astype(jnp.float32)

    inputs = [xw0, h0, c0, params["w_hh"][0] * scale]
    for l in range(1, levels):
        inputs += [params["w_ih"][l] * scale,
                   params["w_hh"][l] * scale,
                   params["b"][l] * scale]

    # Batch-group grid axis: shards independent sequences across TensorCores on
    # v7x ("parallel"); degenerates to grid=(1,) at this toy batch.
    bb = 8 if batch % 8 == 0 else batch
    n_groups = batch // bb

    in_specs = [
        pl.BlockSpec((seq, bb, 4 * H), lambda g: (0, g, 0)),
        pl.BlockSpec((levels, bb, H), lambda g: (0, g, 0)),
        pl.BlockSpec((levels, bb, H), lambda g: (0, g, 0)),
        pl.BlockSpec((H, 4 * H), lambda g: (0, 0)),
    ]
    for _ in range(1, levels):
        in_specs += [pl.BlockSpec((H, 4 * H), lambda g: (0, 0)),
                     pl.BlockSpec((H, 4 * H), lambda g: (0, 0)),
                     pl.BlockSpec((1, 4 * H), lambda g: (0, 0))]
    out_spec = pl.BlockSpec((bb, seq * H), lambda g: (g, 0))

    h_top = pl.pallas_call(
        _make_kernel(seq, levels, H),
        out_shape=jax.ShapeDtypeStruct((batch, seq * H), jnp.float32),
        grid=(n_groups,),
        in_specs=in_specs,
        out_specs=out_spec,
        compiler_params=pltpu.CompilerParams(
            dimension_semantics=("parallel",)),
    )(*inputs)

    # Linear(H, 1) head + bias done once, outside the kernel, over all
    # (batch, seq) hiddens: removes seq XLU lane reductions and the width-1
    # lane concat from the serial recurrence.
    h_top = h_top.reshape(batch, seq, H)
    y = jnp.einsum("bsh,ho->bso", h_top, params["w_lin"]) + params["b_lin"]
    # (batch, seq) -> (seq, batch); mirrors torch.stack(outputs).squeeze()
    return jnp.squeeze(y[..., 0].T)


def sequence_forward_ref(x, h0, c0, params):
    """Pure-JAX reference of the same math (for correctness check)."""
    seq, batch, _ = x.shape
    levels, _, H = h0.shape
    h = [h0[l] for l in range(levels)]
    c = [c0[l] for l in range(levels)]
    outs = []
    for t in range(seq):
        xt = x[t]
        for l in range(levels):
            gates = xt @ params["w_ih"][l] + h[l] @ params["w_hh"][l] + params["b"][l]
            i_g = jax.nn.sigmoid(gates[:, 0 * H:1 * H])
            f_g = jax.nn.sigmoid(gates[:, 1 * H:2 * H])
            g_g = jnp.tanh(gates[:, 2 * H:3 * H])
            o_g = jax.nn.sigmoid(gates[:, 3 * H:4 * H])
            c[l] = f_g * c[l] + i_g * g_g
            h[l] = o_g * jnp.tanh(c[l])
            xt = h[l]
        outs.append(xt @ params["w_lin"] + params["b_lin"])
    return jnp.squeeze(jnp.stack(outs))


def init_params(key, input_size, hidden, levels):
    """Deterministic init mirroring nn.LSTM/nn.Linear shapes (U(-1/sqrt(H), 1/sqrt(H)))."""
    k = 1.0 / np.sqrt(hidden)
    params = {"w_ih": [], "w_hh": [], "b": []}
    for l in range(levels):
        fan_in = input_size if l == 0 else hidden
        key, k1, k2, k3, k4 = jax.random.split(key, 5)
        # stored transposed (fan_in, 4H) so the kernel does x @ W
        params["w_ih"].append(jax.random.uniform(k1, (fan_in, 4 * hidden), jnp.float32, -k, k))
        params["w_hh"].append(jax.random.uniform(k2, (hidden, 4 * hidden), jnp.float32, -k, k))
        b_ih = jax.random.uniform(k3, (4 * hidden,), jnp.float32, -k, k)
        b_hh = jax.random.uniform(k4, (4 * hidden,), jnp.float32, -k, k)
        params["b"].append((b_ih + b_hh).reshape(1, 4 * hidden))
    key, k5, k6 = jax.random.split(key, 3)
    params["w_lin"] = jax.random.uniform(k5, (hidden, 1), jnp.float32, -k, k)
    params["b_lin"] = jax.random.uniform(k6, (1, 1), jnp.float32, -k, k)
    return params, key


# TODO(synk): the `future is not None` autoregressive branch (torch.stack of a
# scalar future sample with the previous prediction) is not implemented here;
# only the future=None path is reproduced.

if __name__ == "__main__":
    SEQ, BATCH, INPUT_SIZE, HIDDEN, LEVELS = 8, 2, 4, 32, 2

    key = jax.random.PRNGKey(0)
    params, key = init_params(key, INPUT_SIZE, HIDDEN, LEVELS)

    key, kx, kh, kc = jax.random.split(key, 4)
    x = jax.random.normal(kx, (SEQ, BATCH, INPUT_SIZE), jnp.float32)
    # module draws its initial hidden state from torch.rand -> uniform [0, 1)
    h0 = jax.random.uniform(kh, (LEVELS, BATCH, HIDDEN), jnp.float32)
    c0 = jax.random.uniform(kc, (LEVELS, BATCH, HIDDEN), jnp.float32)

    out = sequence_forward_pallas(x, h0, c0, params)
    out = jax.block_until_ready(out)

    ref = sequence_forward_ref(x, h0, c0, params)
    assert out.shape == (SEQ, BATCH), out.shape
    np.testing.assert_allclose(np.asarray(out), np.asarray(ref), rtol=1e-4, atol=1e-4)

    print("KERNEL_OK")
</pallas_src>

<mosaic_0001>
module attributes {stable_mosaic.version = 11 : i64} {
  func.func @kernel(%arg0: i32, %arg1: memref<8x2x128xf32, #tpu.memory_space<vmem>>, %arg2: memref<2x2x32xf32, #tpu.memory_space<vmem>>, %arg3: memref<2x2x32xf32, #tpu.memory_space<vmem>>, %arg4: memref<32x128xf32, #tpu.memory_space<vmem>>, %arg5: memref<32x128xf32, #tpu.memory_space<vmem>>, %arg6: memref<32x128xf32, #tpu.memory_space<vmem>>, %arg7: memref<1x128xf32, #tpu.memory_space<vmem>>, %arg8: memref<2x256xf32, #tpu.memory_space<vmem>>) attributes {dimension_semantics = [#tpu.dimension_semantics<parallel>], iteration_bounds = array<i64: 1>, scalar_prefetch = 0 : i64, scratch_operands = 0 : i64, tpu.core_type = #tpu.core_type<tc>, window_params = [{transform_indices = @transform_0, window_bounds = array<i64: 8, 2, 128>}, {transform_indices = @transform_1, window_bounds = array<i64: 2, 2, 32>}, {transform_indices = @transform_2, window_bounds = array<i64: 2, 2, 32>}, {pipeline_mode = #tpu.pipeline_mode<synchronous>, transform_indices = @transform_3, window_bounds = array<i64: 32, 128>}, {pipeline_mode = #tpu.pipeline_mode<synchronous>, transform_indices = @transform_4, window_bounds = array<i64: 32, 128>}, {pipeline_mode = #tpu.pipeline_mode<synchronous>, transform_indices = @transform_5, window_bounds = array<i64: 32, 128>}, {pipeline_mode = #tpu.pipeline_mode<synchronous>, transform_indices = @transform_6, window_bounds = array<i64: 1, 128>}, {transform_indices = @transform_7, window_bounds = array<i64: 2, 256>}]} {
    %c0 = arith.constant 0 : index
    %c0_0 = arith.constant 0 : index
    %c0_1 = arith.constant 0 : index
    %0 = vector.load %arg2[%c0, %c0_0, %c0_1] : memref<2x2x32xf32, #tpu.memory_space<vmem>>, vector<1x2x32xf32>
    %1 = vector.shape_cast %0 : vector<1x2x32xf32> to vector<2x32xf32>
    %c1 = arith.constant 1 : index
    %c0_2 = arith.constant 0 : index
    %c0_3 = arith.constant 0 : index
    %2 = vector.load %arg2[%c1, %c0_2, %c0_3] : memref<2x2x32xf32, #tpu.memory_space<vmem>>, vector<1x2x32xf32>
    %3 = vector.shape_cast %2 : vector<1x2x32xf32> to vector<2x32xf32>
    %c0_4 = arith.constant 0 : index
    %c0_5 = arith.constant 0 : index
    %c0_6 = arith.constant 0 : index
    %4 = vector.load %arg3[%c0_4, %c0_5, %c0_6] : memref<2x2x32xf32, #tpu.memory_space<vmem>>, vector<1x2x32xf32>
    %5 = vector.shape_cast %4 : vector<1x2x32xf32> to vector<2x32xf32>
    %c1_7 = arith.constant 1 : index
    %c0_8 = arith.constant 0 : index
    %c0_9 = arith.constant 0 : index
    %6 = vector.load %arg3[%c1_7, %c0_8, %c0_9] : memref<2x2x32xf32, #tpu.memory_space<vmem>>, vector<1x2x32xf32>
    %7 = vector.shape_cast %6 : vector<1x2x32xf32> to vector<2x32xf32>
    %c0_10 = arith.constant 0 : index
    %c0_11 = arith.constant 0 : index
    %c0_12 = arith.constant 0 : index
    %8 = vector.load %arg1[%c0_10, %c0_11, %c0_12] : memref<8x2x128xf32, #tpu.memory_space<vmem>>, vector<1x2x128xf32>
    %9 = vector.shape_cast %8 : vector<1x2x128xf32> to vector<2x128xf32>
    %c0_13 = arith.constant 0 : index
    %c0_14 = arith.constant 0 : index
    %10 = vector.load %arg4[%c0_13, %c0_14] : memref<32x128xf32, #tpu.memory_space<vmem>>, vector<32x128xf32>
    %cst = arith.constant dense<0.000000e+00> : vector<2x128xf32>
    %11 = tpu.matmul %1, %10, %cst {dimension_numbers = #tpu.dot_dimension_numbers<[1], [0], [0], [1], [0, 0, 1, 1], [], []>} : vector<2x32xf32>, vector<32x128xf32>, vector<2x128xf32> -> vector<2x128xf32>
    %12 = arith.addf %9, %11 : vector<2x128xf32>
    %13 = math.tanh %12 : vector<2x128xf32>
    %14 = vector.extract_strided_slice %13 {offsets = [0, 0], sizes = [2, 32], strides = [1, 1]} : vector<2x128xf32> to vector<2x32xf32>
    %cst_15 = arith.constant 1.000000e+00 : f32
    %15 = vector.broadcast %cst_15 : f32 to vector<2x32xf32>
    %16 = arith.addf %15, %14 : vector<2x32xf32>
    %cst_16 = arith.constant 5.000000e-01 : f32
    %17 = vector.broadcast %cst_16 : f32 to vector<2x32xf32>
    %18 = arith.mulf %17, %16 : vector<2x32xf32>
    %19 = vector.extract_strided_slice %13 {offsets = [0, 32], sizes = [2, 32], strides = [1, 1]} : vector<2x128xf32> to vector<2x32xf32>
    %cst_17 = arith.constant 1.000000e+00 : f32
    %20 = vector.broadcast %cst_17 : f32 to vector<2x32xf32>
    %21 = arith.addf %20, %19 : vector<2x32xf32>
    %cst_18 = arith.constant 5.000000e-01 : f32
    %22 = vector.broadcast %cst_18 : f32 to vector<2x32xf32>
    %23 = arith.mulf %22, %21 : vector<2x32xf32>
    %24 = vector.extract_strided_slice %13 {offsets = [0, 64], sizes = [2, 32], strides = [1, 1]} : vector<2x128xf32> to vector<2x32xf32>
    %25 = vector.extract_strided_slice %13 {offsets = [0, 96], sizes = [2, 32], strides = [1, 1]} : vector<2x128xf32> to vector<2x32xf32>
    %cst_19 = arith.constant 1.000000e+00 : f32
    %26 = vector.broadcast %cst_19 : f32 to vector<2x32xf32>
    %27 = arith.addf %26, %25 : vector<2x32xf32>
    %cst_20 = arith.constant 5.000000e-01 : f32
    %28 = vector.broadcast %cst_20 : f32 to vector<2x32xf32>
    %29 = arith.mulf %28, %27 : vector<2x32xf32>
    %30 = arith.mulf %23, %5 : vector<2x32xf32>
    %31 = arith.mulf %18, %24 : vector<2x32xf32>
    %32 = arith.addf %30, %31 : vector<2x32xf32>
    %33 = math.tanh %32 : vector<2x32xf32>
    %34 = arith.mulf %29, %33 : vector<2x32xf32>
    %c0_21 = arith.constant 0 : index
    %c0_22 = arith.constant 0 : index
    %35 = vector.load %arg5[%c0_21, %c0_22] : memref<32x128xf32, #tpu.memory_space<vmem>>, vector<32x128xf32>
    %c0_23 = arith.constant 0 : index
    %c0_24 = arith.constant 0 : index
    %36 = vector.load %arg6[%c0_23, %c0_24] : memref<32x128xf32, #tpu.memory_space<vmem>>, vector<32x128xf32>
    %c0_25 = arith.constant 0 : index
    %c0_26 = arith.constant 0 : index
    %37 = vector.load %arg7[%c0_25, %c0_26] : memref<1x128xf32, #tpu.memory_space<vmem>>, vector<1x128xf32>
    %cst_27 = arith.constant dense<0.000000e+00> : vector<2x128xf32>
    %38 = tpu.matmul %34, %35, %cst_27 {dimension_numbers = #tpu.dot_dimension_numbers<[1], [0], [0], [1], [0, 0, 1, 1], [], []>} : vector<2x32xf32>, vector<32x128xf32>, vector<2x128xf32> -> vector<2x128xf32>
    %cst_28 = arith.constant dense<0.000000e+00> : vector<2x128xf32>
    %39 = tpu.matmul %3, %36, %cst_28 {dimension_numbers = #tpu.dot_dimension_numbers<[1], [0], [0], [1], [0, 0, 1, 1], [], []>} : vector<2x32xf32>, vector<32x128xf32>, vector<2x128xf32> -> vector<2x128xf32>
    %40 = arith.addf %38, %39 : vector<2x128xf32>
    %41 = vector.broadcast %37 : vector<1x128xf32> to vector<2x128xf32>
    %42 = arith.addf %40, %41 : vector<2x128xf32>
    %43 = math.tanh %42 : vector<2x128xf32>
    %44 = vector.extract_strided_slice %43 {offsets = [0, 0], sizes = [2, 32], strides = [1, 1]} : vector<2x128xf32> to vector<2x32xf32>
    %cst_29 = arith.constant 1.000000e+00 : f32
    %45 = vector.broadcast %cst_29 : f32 to vector<2x32xf32>
    %46 = arith.addf %45, %44 : vector<2x32xf32>
    %cst_30 = arith.constant 5.000000e-01 : f32
    %47 = vector.broadcast %cst_30 : f32 to vector<2x32xf32>
    %48 = arith.mulf %47, %46 : vector<2x32xf32>
    %49 = vector.extract_strided_slice %43 {offsets = [0, 32], sizes = [2, 32], strides = [1, 1]} : vector<2x128xf32> to vector<2x32xf32>
    %cst_31 = arith.constant 1.000000e+00 : f32
    %50 = vector.broadcast %cst_31 : f32 to vector<2x32xf32>
    %51 = arith.addf %50, %49 : vector<2x32xf32>
    %cst_32 = arith.constant 5.000000e-01 : f32
    %52 = vector.broadcast %cst_32 : f32 to vector<2x32xf32>
    %53 = arith.mulf %52, %51 : vector<2x32xf32>
    %54 = vector.extract_strided_slice %43 {offsets = [0, 64], sizes = [2, 32], strides = [1, 1]} : vector<2x128xf32> to vector<2x32xf32>
    %55 = vector.extract_strided_slice %43 {offsets = [0, 96], sizes = [2, 32], strides = [1, 1]} : vector<2x128xf32> to vector<2x32xf32>
    %cst_33 = arith.constant 1.000000e+00 : f32
    %56 = vector.broadcast %cst_33 : f32 to vector<2x32xf32>
    %57 = arith.addf %56, %55 : vector<2x32xf32>
    %cst_34 = arith.constant 5.000000e-01 : f32
    %58 = vector.broadcast %cst_34 : f32 to vector<2x32xf32>
    %59 = arith.mulf %58, %57 : vector<2x32xf32>
    %60 = arith.mulf %53, %7 : vector<2x32xf32>
    %61 = arith.mulf %48, %54 : vector<2x32xf32>
    %62 = arith.addf %60, %61 : vector<2x32xf32>
    %63 = math.tanh %62 : vector<2x32xf32>
    %64 = arith.mulf %59, %63 : vector<2x32xf32>
    %c0_35 = arith.constant 0 : index
    %c0_36 = arith.constant 0 : index
    %65 = vector.load %arg8[%c0_35, %c0_36] : memref<2x256xf32, #tpu.memory_space<vmem>>, vector<2x32xf32>
    tpu.vector_store %arg8[%c0_35, %c0_36], %64 {strides = array<i32>} : memref<2x256xf32, #tpu.memory_space<vmem>>, vector<2x32xf32>,
    %c1_37 = arith.constant 1 : index
    %c0_38 = arith.constant 0 : index
    %c0_39 = arith.constant 0 : index
    %66 = vector.load %arg1[%c1_37, %c0_38, %c0_39] : memref<8x2x128xf32, #tpu.memory_space<vmem>>, vector<1x2x128xf32>
    %67 = vector.shape_cast %66 : vector<1x2x128xf32> to vector<2x128xf32>
    %c0_40 = arith.constant 0 : index
    %c0_41 = arith.constant 0 : index
    %68 = vector.load %arg4[%c0_40, %c0_41] : memref<32x128xf32, #tpu.memory_space<vmem>>, vector<32x128xf32>
    %cst_42 = arith.constant dense<0.000000e+00> : vector<2x128xf32>
    %69 = tpu.matmul %34, %68, %cst_42 {dimension_numbers = #tpu.dot_dimension_numbers<[1], [0], [0], [1], [0, 0, 1, 1], [], []>} : vector<2x32xf32>, vector<32x128xf32>, vector<2x128xf32> -> vector<2x128xf32>
    %70 = arith.addf %67, %69 : vector<2x128xf32>
    %71 = math.tanh %70 : vector<2x128xf32>
    %72 = vector.extract_strided_slice %71 {offsets = [0, 0], sizes = [2, 32], strides = [1, 1]} : vector<2x128xf32> to vector<2x32xf32>
    %cst_43 = arith.constant 1.000000e+00 : f32
    %73 = vector.broadcast %cst_43 : f32 to vector<2x32xf32>
    %74 = arith.addf %73, %72 : vector<2x32xf32>
    %cst_44 = arith.constant 5.000000e-01 : f32
    %75 = vector.broadcast %cst_44 : f32 to vector<2x32xf32>
    %76 = arith.mulf %75, %74 : vector<2x32xf32>
    %77 = vector.extract_strided_slice %71 {offsets = [0, 32], sizes = [2, 32], strides = [1, 1]} : vector<2x128xf32> to vector<2x32xf32>
    %cst_45 = arith.constant 1.000000e+00 : f32
    %78 = vector.broadcast %cst_45 : f32 to vector<2x32xf32>
    %79 = arith.addf %78, %77 : vector<2x32xf32>
    %cst_46 = arith.constant 5.000000e-01 : f32
    %80 = vector.broadcast %cst_46 : f32 to vector<2x32xf32>
    %81 = arith.mulf %80, %79 : vector<2x32xf32>
    %82 = vector.extract_strided_slice %71 {offsets = [0, 64], sizes = [2, 32], strides = [1, 1]} : vector<2x128xf32> to vector<2x32xf32>
    %83 = vector.extract_strided_slice %71 {offsets = [0, 96], sizes = [2, 32], strides = [1, 1]} : vector<2x128xf32> to vector<2x32xf32>
    %cst_47 = arith.constant 1.000000e+00 : f32
    %84 = vector.broadcast %cst_47 : f32 to vector<2x32xf32>
    %85 = arith.addf %84, %83 : vector<2x32xf32>
    %cst_48 = arith.constant 5.000000e-01 : f32
    %86 = vector.broadcast %cst_48 : f32 to vector<2x32xf32>
    %87 = arith.mulf %86, %85 : vector<2x32xf32>
    %88 = arith.mulf %81, %32 : vector<2x32xf32>
    %89 = arith.mulf %76, %82 : vector<2x32xf32>
    %90 = arith.addf %88, %89 : vector<2x32xf32>
    %91 = math.tanh %90 : vector<2x32xf32>
    %92 = arith.mulf %87, %91 : vector<2x32xf32>
    %c0_49 = arith.constant 0 : index
    %c0_50 = arith.constant 0 : index
    %93 = vector.load %arg5[%c0_49, %c0_50] : memref<32x128xf32, #tpu.memory_space<vmem>>, vector<32x128xf32>
    %c0_51 = arith.constant 0 : index
    %c0_52 = arith.constant 0 : index
    %94 = vector.load %arg6[%c0_51, %c0_52] : memref<32x128xf32, #tpu.memory_space<vmem>>, vector<32x128xf32>
    %c0_53 = arith.constant 0 : index
    %c0_54 = arith.constant 0 : index
    %95 = vector.load %arg7[%c0_53, %c0_54] : memref<1x128xf32, #tpu.memory_space<vmem>>, vector<1x128xf32>
    %cst_55 = arith.constant dense<0.000000e+00> : vector<2x128xf32>
    %96 = tpu.matmul %92, %93, %cst_55 {dimension_numbers = #tpu.dot_dimension_numbers<[1], [0], [0], [1], [0, 0, 1, 1], [], []>} : vector<2x32xf32>, vector<32x128xf32>, vector<2x128xf32> -> vector<2x128xf32>
    %cst_56 = arith.constant dense<0.000000e+00> : vector<2x128xf32>
    %97 = tpu.matmul %64, %94, %cst_56 {dimension_numbers = #tpu.dot_dimension_numbers<[1], [0], [0], [1], [0, 0, 1, 1], [], []>} : vector<2x32xf32>, vector<32x128xf32>, vector<2x128xf32> -> vector<2x128xf32>
    %98 = arith.addf %96, %97 : vector<2x128xf32>
    %99 = vector.broadcast %95 : vector<1x128xf32> to vector<2x128xf32>
    %100 = arith.addf %98, %99 : vector<2x128xf32>
    %101 = math.tanh %100 : vector<2x128xf32>
    %102 = vector.extract_strided_slice %101 {offsets = [0, 0], sizes = [2, 32], strides = [1, 1]} : vector<2x128xf32> to vector<2x32xf32>
    %cst_57 = arith.constant 1.000000e+00 : f32
    %103 = vector.broadcast %cst_57 : f32 to vector<2x32xf32>
    %104 = arith.addf %103, %102 : vector<2x32xf32>
    %cst_58 = arith.constant 5.000000e-01 : f32
    %105 = vector.broadcast %cst_58 : f32 to vector<2x32xf32>
    %106 = arith.mulf %105, %104 : vector<2x32xf32>
    %107 = vector.extract_strided_slice %101 {offsets = [0, 32], sizes = [2, 32], strides = [1, 1]} : vector<2x128xf32> to vector<2x32xf32>
    %cst_59 = arith.constant 1.000000e+00 : f32
    %108 = vector.broadcast %cst_59 : f32 to vector<2x32xf32>
    %109 = arith.addf %108, %107 : vector<2x32xf32>
    %cst_60 = arith.constant 5.000000e-01 : f32
    %110 = vector.broadcast %cst_60 : f32 to vector<2x32xf32>
    %111 = arith.mulf %110, %109 : vector<2x32xf32>
    %112 = vector.extract_strided_slice %101 {offsets = [0, 64], sizes = [2, 32], strides = [1, 1]} : vector<2x128xf32> to vector<2x32xf32>
    %113 = vector.extract_strided_slice %101 {offsets = [0, 96], sizes = [2, 32], strides = [1, 1]} : vector<2x128xf32> to vector<2x32xf32>
    %cst_61 = arith.constant 1.000000e+00 : f32
    %114 = vector.broadcast %cst_61 : f32 to vector<2x32xf32>
    %115 = arith.addf %114, %113 : vector<2x32xf32>
    %cst_62 = arith.constant 5.000000e-01 : f32
    %116 = vector.broadcast %cst_62 : f32 to vector<2x32xf32>
    %117 = arith.mulf %116, %115 : vector<2x32xf32>
    %118 = arith.mulf %111, %62 : vector<2x32xf32>
    %119 = arith.mulf %106, %112 : vector<2x32xf32>
    %120 = arith.addf %118, %119 : vector<2x32xf32>
    %121 = math.tanh %120 : vector<2x32xf32>
    %122 = arith.mulf %117, %121 : vector<2x32xf32>
    %c0_63 = arith.constant 0 : index
    %c32 = arith.constant 32 : index
    %123 = vector.load %arg8[%c0_63, %c32] : memref<2x256xf32, #tpu.memory_space<vmem>>, vector<2x32xf32>
    tpu.vector_store %arg8[%c0_63, %c32], %122 {strides = array<i32>} : memref<2x256xf32, #tpu.memory_space<vmem>>, vector<2x32xf32>,
    %c2 = arith.constant 2 : index
    %c0_64 = arith.constant 0 : index
    %c0_65 = arith.constant 0 : index
    %124 = vector.load %arg1[%c2, %c0_64, %c0_65] : memref<8x2x128xf32, #tpu.memory_space<vmem>>, vector<1x2x128xf32>
    %125 = vector.shape_cast %124 : vector<1x2x128xf32> to vector<2x128xf32>
    %c0_66 = arith.constant 0 : index
    %c0_67 = arith.constant 0 : index
    %126 = vector.load %arg4[%c0_66, %c0_67] : memref<32x128xf32, #tpu.memory_space<vmem>>, vector<32x128xf32>
    %cst_68 = arith.constant dense<0.000000e+00> : vector<2x128xf32>
    %127 = tpu.matmul %92, %126, %cst_68 {dimension_numbers = #tpu.dot_dimension_numbers<[1], [0], [0], [1], [0, 0, 1, 1], [], []>} : vector<2x32xf32>, vector<32x128xf32>, vector<2x128xf32> -> vector<2x128xf32>
    %128 = arith.addf %125, %127 : vector<2x128xf32>
    %129 = math.tanh %128 : vector<2x128xf32>
    %130 = vector.extract_strided_slice %129 {offsets = [0, 0], sizes = [2, 32], strides = [1, 1]} : vector<2x128xf32> to vector<2x32xf32>
    %cst_69 = arith.constant 1.000000e+00 : f32
    %131 = vector.broadcast %cst_69 : f32 to vector<2x32xf32>
    %132 = arith.addf %131, %130 : vector<2x32xf32>
    %cst_70 = arith.constant 5.000000e-01 : f32
    %133 = vector.broadcast %cst_70 : f32 to vector<2x32xf32>
    %134 = arith.mulf %133, %132 : vector<2x32xf32>
    %135 = vector.extract_strided_slice %129 {offsets = [0, 32], sizes = [2, 32], strides = [1, 1]} : vector<2x128xf32> to vector<2x32xf32>
    %cst_71 = arith.constant 1.000000e+00 : f32
    %136 = vector.broadcast %cst_71 : f32 to vector<2x32xf32>
    %137 = arith.addf %136, %135 : vector<2x32xf32>
    %cst_72 = arith.constant 5.000000e-01 : f32
    %138 = vector.broadcast %cst_72 : f32 to vector<2x32xf32>
    %139 = arith.mulf %138, %137 : vector<2x32xf32>
    %140 = vector.extract_strided_slice %129 {offsets = [0, 64], sizes = [2, 32], strides = [1, 1]} : vector<2x128xf32> to vector<2x32xf32>
    %141 = vector.extract_strided_slice %129 {offsets = [0, 96], sizes = [2, 32], strides = [1, 1]} : vector<2x128xf32> to vector<2x32xf32>
    %cst_73 = arith.constant 1.000000e+00 : f32
    %142 = vector.broadcast %cst_73 : f32 to vector<2x32xf32>
    %143 = arith.addf %142, %141 : vector<2x32xf32>
    %cst_74 = arith.constant 5.000000e-01 : f32
    %144 = vector.broadcast %cst_74 : f32 to vector<2x32xf32>
    %145 = arith.mulf %144, %143 : vector<2x32xf32>
    %146 = arith.mulf %139, %90 : vector<2x32xf32>
    %147 = arith.mulf %134, %140 : vector<2x32xf32>
    %148 = arith.addf %146, %147 : vector<2x32xf32>
    %149 = math.tanh %148 : vector<2x32xf32>
    %150 = arith.mulf %145, %149 : vector<2x32xf32>
    %c0_75 = arith.constant 0 : index
    %c0_76 = arith.constant 0 : index
    %151 = vector.load %arg5[%c0_75, %c0_76] : memref<32x128xf32, #tpu.memory_space<vmem>>, vector<32x128xf32>
    %c0_77 = arith.constant 0 : index
    %c0_78 = arith.constant 0 : index
    %152 = vector.load %arg6[%c0_77, %c0_78] : memref<32x128xf32, #tpu.memory_space<vmem>>, vector<32x128xf32>
    %c0_79 = arith.constant 0 : index
    %c0_80 = arith.constant 0 : index
    %153 = vector.load %arg7[%c0_79, %c0_80] : memref<1x128xf32, #tpu.memory_space<vmem>>, vector<1x128xf32>
    %cst_81 = arith.constant dense<0.000000e+00> : vector<2x128xf32>
    %154 = tpu.matmul %150, %151, %cst_81 {dimension_numbers = #tpu.dot_dimension_numbers<[1], [0], [0], [1], [0, 0, 1, 1], [], []>} : vector<2x32xf32>, vector<32x128xf32>, vector<2x128xf32> -> vector<2x128xf32>
    %cst_82 = arith.constant dense<0.000000e+00> : vector<2x128xf32>
    %155 = tpu.matmul %122, %152, %cst_82 {dimension_numbers = #tpu.dot_dimension_numbers<[1], [0], [0], [1], [0, 0, 1, 1], [], []>} : vector<2x32xf32>, vector<32x128xf32>, vector<2x128xf32> -> vector<2x128xf32>
    %156 = arith.addf %154, %155 : vector<2x128xf32>
    %157 = vector.broadcast %153 : vector<1x128xf32> to vector<2x128xf32>
    %158 = arith.addf %156, %157 : vector<2x128xf32>
    %159 = math.tanh %158 : vector<2x128xf32>
    %160 = vector.extract_strided_slice %159 {offsets = [0, 0], sizes = [2, 32], strides = [1, 1]} : vector<2x128xf32> to vector<2x32xf32>
    %cst_83 = arith.constant 1.000000e+00 : f32
    %161 = vector.broadcast %cst_83 : f32 to vector<2x32xf32>
    %162 = arith.addf %161, %160 : vector<2x32xf32>
    %cst_84 = arith.constant 5.000000e-01 : f32
    %163 = vector.broadcast %cst_84 : f32 to vector<2x32xf32>
    %164 = arith.mulf %163, %162 : vector<2x32xf32>
    %165 = vector.extract_strided_slice %159 {offsets = [0, 32], sizes = [2, 32], strides = [1, 1]} : vector<2x128xf32> to vector<2x32xf32>
    %cst_85 = arith.constant 1.000000e+00 : f32
    %166 = vector.broadcast %cst_85 : f32 to vector<2x32xf32>
    %167 = arith.addf %166, %165 : vector<2x32xf32>
    %cst_86 = arith.constant 5.000000e-01 : f32
    %168 = vector.broadcast %cst_86 : f32 to vector<2x32xf32>
    %169 = arith.mulf %168, %167 : vector<2x32xf32>
    %170 = vector.extract_strided_slice %159 {offsets = [0, 64], sizes = [2, 32], strides = [1, 1]} : vector<2x128xf32> to vector<2x32xf32>
    %171 = vector.extract_strided_slice %159 {offsets = [0, 96], sizes = [2, 32], strides = [1, 1]} : vector<2x128xf32> to vector<2x32xf32>
    %cst_87 = arith.constant 1.000000e+00 : f32
    %172 = vector.broadcast %cst_87 : f32 to vector<2x32xf32>
    %173 = arith.addf %172, %171 : vector<2x32xf32>
    %cst_88 = arith.constant 5.000000e-01 : f32
    %174 = vector.broadcast %cst_88 : f32 to vector<2x32xf32>
    %175 = arith.mulf %174, %173 : vector<2x32xf32>
    %176 = arith.mulf %169, %120 : vector<2x32xf32>
    %177 = arith.mulf %164, %170 : vector<2x32xf32>
    %178 = arith.addf %176, %177 : vector<2x32xf32>
    %179 = math.tanh %178 : vector<2x32xf32>
    %180 = arith.mulf %175, %179 : vector<2x32xf32>
    %c0_89 = arith.constant 0 : index
    %c64 = arith.constant 64 : index
    %181 = vector.load %arg8[%c0_89, %c64] : memref<2x256xf32, #tpu.memory_space<vmem>>, vector<2x32xf32>
    tpu.vector_store %arg8[%c0_89, %c64], %180 {strides = array<i32>} : memref<2x256xf32, #tpu.memory_space<vmem>>, vector<2x32xf32>,
    %c3 = arith.constant 3 : index
    %c0_90 = arith.constant 0 : index
    %c0_91 = arith.constant 0 : index
    %182 = vector.load %arg1[%c3, %c0_90, %c0_91] : memref<8x2x128xf32, #tpu.memory_space<vmem>>, vector<1x2x128xf32>
    %183 = vector.shape_cast %182 : vector<1x2x128xf32> to vector<2x128xf32>
    %c0_92 = arith.constant 0 : index
    %c0_93 = arith.constant 0 : index
    %184 = vector.load %arg4[%c0_92, %c0_93] : memref<32x128xf32, #tpu.memory_space<vmem>>, vector<32x128xf32>
    %cst_94 = arith.constant dense<0.000000e+00> : vector<2x128xf32>
    %185 = tpu.matmul %150, %184, %cst_94 {dimension_numbers = #tpu.dot_dimension_numbers<[1], [0], [0], [1], [0, 0, 1, 1], [], []>} : vector<2x32xf32>, vector<32x128xf32>, vector<2x128xf32> -> vector<2x128xf32>
    %186 = arith.addf %183, %185 : vector<2x128xf32>
    %187 = math.tanh %186 : vector<2x128xf32>
    %188 = vector.extract_strided_slice %187 {offsets = [0, 0], sizes = [2, 32], strides = [1, 1]} : vector<2x128xf32> to vector<2x32xf32>
    %cst_95 = arith.constant 1.000000e+00 : f32
    %189 = vector.broadcast %cst_95 : f32 to vector<2x32xf32>
    %190 = arith.addf %189, %188 : vector<2x32xf32>
    %cst_96 = arith.constant 5.000000e-01 : f32
    %191 = vector.broadcast %cst_96 : f32 to vector<2x32xf32>
    %192 = arith.mulf %191, %190 : vector<2x32xf32>
    %193 = vector.extract_strided_slice %187 {offsets = [0, 32], sizes = [2, 32], strides = [1, 1]} : vector<2x128xf32> to vector<2x32xf32>
    %cst_97 = arith.constant 1.000000e+00 : f32
    %194 = vector.broadcast %cst_97 : f32 to vector<2x32xf32>
    %195 = arith.addf %194, %193 : vector<2x32xf32>
    %cst_98 = arith.constant 5.000000e-01 : f32
    %196 = vector.broadcast %cst_98 : f32 to vector<2x32xf32>
    %197 = arith.mulf %196, %195 : vector<2x32xf32>
    %198 = vector.extract_strided_slice %187 {offsets = [0, 64], sizes = [2, 32], strides = [1, 1]} : vector<2x128xf32> to vector<2x32xf32>
    %199 = vector.extract_strided_slice %187 {offsets = [0, 96], sizes = [2, 32], strides = [1, 1]} : vector<2x128xf32> to vector<2x32xf32>
    %cst_99 = arith.constant 1.000000e+00 : f32
    %200 = vector.broadcast %cst_99 : f32 to vector<2x32xf32>
    %201 = arith.addf %200, %199 : vector<2x32xf32>
    %cst_100 = arith.constant 5.000000e-01 : f32
    %202 = vector.broadcast %cst_100 : f32 to vector<2x32xf32>
    %203 = arith.mulf %202, %201 : vector<2x32xf32>
    %204 = arith.mulf %197, %148 : vector<2x32xf32>
    %205 = arith.mulf %192, %198 : vector<2x32xf32>
    %206 = arith.addf %204, %205 : vector<2x32xf32>
    %207 = math.tanh %206 : vector<2x32xf32>
    %208 = arith.mulf %203, %207 : vector<2x32xf32>
    %c0_101 = arith.constant 0 : index
    %c0_102 = arith.constant 0 : index
    %209 = vector.load %arg5[%c0_101, %c0_102] : memref<32x128xf32, #tpu.memory_space<vmem>>, vector<32x128xf32>
    %c0_103 = arith.constant 0 : index
    %c0_104 = arith.constant 0 : index
    %210 = vector.load %arg6[%c0_103, %c0_104] : memref<32x128xf32, #tpu.memory_space<vmem>>, vector<32x128xf32>
    %c0_105 = arith.constant 0 : index
    %c0_106 = arith.constant 0 : index
    %211 = vector.load %arg7[%c0_105, %c0_106] : memref<1x128xf32, #tpu.memory_space<vmem>>, vector<1x128xf32>
    %cst_107 = arith.constant dense<0.000000e+00> : vector<2x128xf32>
    %212 = tpu.matmul %208, %209, %cst_107 {dimension_numbers = #tpu.dot_dimension_numbers<[1], [0], [0], [1], [0, 0, 1, 1], [], []>} : vector<2x32xf32>, vector<32x128xf32>, vector<2x128xf32> -> vector<2x128xf32>
    %cst_108 = arith.constant dense<0.000000e+00> : vector<2x128xf32>
    %213 = tpu.matmul %180, %210, %cst_108 {dimension_numbers = #tpu.dot_dimension_numbers<[1], [0], [0], [1], [0, 0, 1, 1], [], []>} : vector<2x32xf32>, vector<32x128xf32>, vector<2x128xf32> -> vector<2x128xf32>
    %214 = arith.addf %212, %213 : vector<2x128xf32>
    %215 = vector.broadcast %211 : vector<1x128xf32> to vector<2x128xf32>
    %216 = arith.addf %214, %215 : vector<2x128xf32>
    %217 = math.tanh %216 : vector<2x128xf32>
    %218 = vector.extract_strided_slice %217 {offsets = [0, 0], sizes = [2, 32], strides = [1, 1]} : vector<2x128xf32> to vector<2x32xf32>
    %cst_109 = arith.constant 1.000000e+00 : f32
    %219 = vector.broadcast %cst_109 : f32 to vector<2x32xf32>
    %220 = arith.addf %219, %218 : vector<2x32xf32>
    %cst_110 = arith.constant 5.000000e-01 : f32
    %221 = vector.broadcast %cst_110 : f32 to vector<2x32xf32>
    %222 = arith.mulf %221, %220 : vector<2x32xf32>
    %223 = vector.extract_strided_slice %217 {offsets = [0, 32], sizes = [2, 32], strides = [1, 1]} : vector<2x128xf32> to vector<2x32xf32>
    %cst_111 = arith.constant 1.000000e+00 : f32
    %224 = vector.broadcast %cst_111 : f32 to vector<2x32xf32>
    %225 = arith.addf %224, %223 : vector<2x32xf32>
    %cst_112 = arith.constant 5.000000e-01 : f32
    %226 = vector.broadcast %cst_112 : f32 to vector<2x32xf32>
    %227 = arith.mulf %226, %225 : vector<2x32xf32>
    %228 = vector.extract_strided_slice %217 {offsets = [0, 64], sizes = [2, 32], strides = [1, 1]} : vector<2x128xf32> to vector<2x32xf32>
    %229 = vector.extract_strided_slice %217 {offsets = [0, 96], sizes = [2, 32], strides = [1, 1]} : vector<2x128xf32> to vector<2x32xf32>
    %cst_113 = arith.constant 1.000000e+00 : f32
    %230 = vector.broadcast %cst_113 : f32 to vector<2x32xf32>
    %231 = arith.addf %230, %229 : vector<2x32xf32>
    %cst_114 = arith.constant 5.000000e-01 : f32
    %232 = vector.broadcast %cst_114 : f32 to vector<2x32xf32>
    %233 = arith.mulf %232, %231 : vector<2x32xf32>
    %234 = arith.mulf %227, %178 : vector<2x32xf32>
    %235 = arith.mulf %222, %228 : vector<2x32xf32>
    %236 = arith.addf %234, %235 : vector<2x32xf32>
    %237 = math.tanh %236 : vector<2x32xf32>
    %238 = arith.mulf %233, %237 : vector<2x32xf32>
    %c0_115 = arith.constant 0 : index
    %c96 = arith.constant 96 : index
    %239 = vector.load %arg8[%c0_115, %c96] : memref<2x256xf32, #tpu.memory_space<vmem>>, vector<2x32xf32>
    tpu.vector_store %arg8[%c0_115, %c96], %238 {strides = array<i32>} : memref<2x256xf32, #tpu.memory_space<vmem>>, vector<2x32xf32>,
    %c4 = arith.constant 4 : index
    %c0_116 = arith.constant 0 : index
    %c0_117 = arith.constant 0 : index
    %240 = vector.load %arg1[%c4, %c0_116, %c0_117] : memref<8x2x128xf32, #tpu.memory_space<vmem>>, vector<1x2x128xf32>
    %241 = vector.shape_cast %240 : vector<1x2x128xf32> to vector<2x128xf32>
    %c0_118 = arith.constant 0 : index
    %c0_119 = arith.constant 0 : index
    %242 = vector.load %arg4[%c0_118, %c0_119] : memref<32x128xf32, #tpu.memory_space<vmem>>, vector<32x128xf32>
    %cst_120 = arith.constant dense<0.000000e+00> : vector<2x128xf32>
    %243 = tpu.matmul %208, %242, %cst_120 {dimension_numbers = #tpu.dot_dimension_numbers<[1], [0], [0], [1], [0, 0, 1, 1], [], []>} : vector<2x32xf32>, vector<32x128xf32>, vector<2x128xf32> -> vector<2x128xf32>
    %244 = arith.addf %241, %243 : vector<2x128xf32>
    %245 = math.tanh %244 : vector<2x128xf32>
    %246 = vector.extract_strided_slice %245 {offsets = [0, 0], sizes = [2, 32], strides = [1, 1]} : vector<2x128xf32> to vector<2x32xf32>
    %cst_121 = arith.constant 1.000000e+00 : f32
    %247 = vector.broadcast %cst_121 : f32 to vector<2x32xf32>
    %248 = arith.addf %247, %246 : vector<2x32xf32>
    %cst_122 = arith.constant 5.000000e-01 : f32
    %249 = vector.broadcast %cst_122 : f32 to vector<2x32xf32>
    %250 = arith.mulf %249, %248 : vector<2x32xf32>
    %251 = vector.extract_strided_slice %245 {offsets = [0, 32], sizes = [2, 32], strides = [1, 1]} : vector<2x128xf32> to vector<2x32xf32>
    %cst_123 = arith.constant 1.000000e+00 : f32
    %252 = vector.broadcast %cst_123 : f32 to vector<2x32xf32>
    %253 = arith.addf %252, %251 : vector<2x32xf32>
    %cst_124 = arith.constant 5.000000e-01 : f32
    %254 = vector.broadcast %cst_124 : f32 to vector<2x32xf32>
    %255 = arith.mulf %254, %253 : vector<2x32xf32>
    %256 = vector.extract_strided_slice %245 {offsets = [0, 64], sizes = [2, 32], strides = [1, 1]} : vector<2x128xf32> to vector<2x32xf32>
    %257 = vector.extract_strided_slice %245 {offsets = [0, 96], sizes = [2, 32], strides = [1, 1]} : vector<2x128xf32> to vector<2x32xf32>
    %cst_125 = arith.constant 1.000000e+00 : f32
    %258 = vector.broadcast %cst_125 : f32 to vector<2x32xf32>
    %259 = arith.addf %258, %257 : vector<2x32xf32>
    %cst_126 = arith.constant 5.000000e-01 : f32
    %260 = vector.broadcast %cst_126 : f32 to vector<2x32xf32>
    %261 = arith.mulf %260, %259 : vector<2x32xf32>
    %262 = arith.mulf %255, %206 : vector<2x32xf32>
    %263 = arith.mulf %250, %256 : vector<2x32xf32>
    %264 = arith.addf %262, %263 : vector<2x32xf32>
    %265 = math.tanh %264 : vector<2x32xf32>
    %266 = arith.mulf %261, %265 : vector<2x32xf32>
    %c0_127 = arith.constant 0 : index
    %c0_128 = arith.constant 0 : index
    %267 = vector.load %arg5[%c0_127, %c0_128] : memref<32x128xf32, #tpu.memory_space<vmem>>, vector<32x128xf32>
    %c0_129 = arith.constant 0 : index
    %c0_130 = arith.constant 0 : index
    %268 = vector.load %arg6[%c0_129, %c0_130] : memref<32x128xf32, #tpu.memory_space<vmem>>, vector<32x128xf32>
    %c0_131 = arith.constant 0 : index
    %c0_132 = arith.constant 0 : index
    %269 = vector.load %arg7[%c0_131, %c0_132] : memref<1x128xf32, #tpu.memory_space<vmem>>, vector<1x128xf32>
    %cst_133 = arith.constant dense<0.000000e+00> : vector<2x128xf32>
    %270 = tpu.matmul %266, %267, %cst_133 {dimension_numbers = #tpu.dot_dimension_numbers<[1], [0], [0], [1], [0, 0, 1, 1], [], []>} : vector<2x32xf32>, vector<32x128xf32>, vector<2x128xf32> -> vector<2x128xf32>
    %cst_134 = arith.constant dense<0.000000e+00> : vector<2x128xf32>
    %271 = tpu.matmul %238, %268, %cst_134 {dimension_numbers = #tpu.dot_dimension_numbers<[1], [0], [0], [1], [0, 0, 1, 1], [], []>} : vector<2x32xf32>, vector<32x128xf32>, vector<2x128xf32> -> vector<2x128xf32>
    %272 = arith.addf %270, %271 : vector<2x128xf32>
    %273 = vector.broadcast %269 : vector<1x128xf32> to vector<2x128xf32>
    %274 = arith.addf %272, %273 : vector<2x128xf32>
    %275 = math.tanh %274 : vector<2x128xf32>
    %276 = vector.extract_strided_slice %275 {offsets = [0, 0], sizes = [2, 32], strides = [1, 1]} : vector<2x128xf32> to vector<2x32xf32>
    %cst_135 = arith.constant 1.000000e+00 : f32
    %277 = vector.broadcast %cst_135 : f32 to vector<2x32xf32>
    %278 = arith.addf %277, %276 : vector<2x32xf32>
    %cst_136 = arith.constant 5.000000e-01 : f32
    %279 = vector.broadcast %cst_136 : f32 to vector<2x32xf32>
    %280 = arith.mulf %279, %278 : vector<2x32xf32>
    %281 = vector.extract_strided_slice %275 {offsets = [0, 32], sizes = [2, 32], strides = [1, 1]} : vector<2x128xf32> to vector<2x32xf32>
    %cst_137 = arith.constant 1.000000e+00 : f32
    %282 = vector.broadcast %cst_137 : f32 to vector<2x32xf32>
    %283 = arith.addf %282, %281 : vector<2x32xf32>
    %cst_138 = arith.constant 5.000000e-01 : f32
    %284 = vector.broadcast %cst_138 : f32 to vector<2x32xf32>
    %285 = arith.mulf %284, %283 : vector<2x32xf32>
    %286 = vector.extract_strided_slice %275 {offsets = [0, 64], sizes = [2, 32], strides = [1, 1]} : vector<2x128xf32> to vector<2x32xf32>
    %287 = vector.extract_strided_slice %275 {offsets = [0, 96], sizes = [2, 32], strides = [1, 1]} : vector<2x128xf32> to vector<2x32xf32>
    %cst_139 = arith.constant 1.000000e+00 : f32
    %288 = vector.broadcast %cst_139 : f32 to vector<2x32xf32>
    %289 = arith.addf %288, %287 : vector<2x32xf32>
    %cst_140 = arith.constant 5.000000e-01 : f32
    %290 = vector.broadcast %cst_140 : f32 to vector<2x32xf32>
    %291 = arith.mulf %290, %289 : vector<2x32xf32>
    %292 = arith.mulf %285, %236 : vector<2x32xf32>
    %293 = arith.mulf %280, %286 : vector<2x32xf32>
    %294 = arith.addf %292, %293 : vector<2x32xf32>
    %295 = math.tanh %294 : vector<2x32xf32>
    %296 = arith.mulf %291, %295 : vector<2x32xf32>
    %c0_141 = arith.constant 0 : index
    %c128 = arith.constant 128 : index
    %297 = vector.load %arg8[%c0_141, %c128] : memref<2x256xf32, #tpu.memory_space<vmem>>, vector<2x32xf32>
    tpu.vector_store %arg8[%c0_141, %c128], %296 {strides = array<i32>} : memref<2x256xf32, #tpu.memory_space<vmem>>, vector<2x32xf32>,
    %c5 = arith.constant 5 : index
    %c0_142 = arith.constant 0 : index
    %c0_143 = arith.constant 0 : index
    %298 = vector.load %arg1[%c5, %c0_142, %c0_143] : memref<8x2x128xf32, #tpu.memory_space<vmem>>, vector<1x2x128xf32>
    %299 = vector.shape_cast %298 : vector<1x2x128xf32> to vector<2x128xf32>
    %c0_144 = arith.constant 0 : index
    %c0_145 = arith.constant 0 : index
    %300 = vector.load %arg4[%c0_144, %c0_145] : memref<32x128xf32, #tpu.memory_space<vmem>>, vector<32x128xf32>
    %cst_146 = arith.constant dense<0.000000e+00> : vector<2x128xf32>
    %301 = tpu.matmul %266, %300, %cst_146 {dimension_numbers = #tpu.dot_dimension_numbers<[1], [0], [0], [1], [0, 0, 1, 1], [], []>} : vector<2x32xf32>, vector<32x128xf32>, vector<2x128xf32> -> vector<2x128xf32>
    %302 = arith.addf %299, %301 : vector<2x128xf32>
    %303 = math.tanh %302 : vector<2x128xf32>
    %304 = vector.extract_strided_slice %303 {offsets = [0, 0], sizes = [2, 32], strides = [1, 1]} : vector<2x128xf32> to vector<2x32xf32>
    %cst_147 = arith.constant 1.000000e+00 : f32
    %305 = vector.broadcast %cst_147 : f32 to vector<2x32xf32>
    %306 = arith.addf %305, %304 : vector<2x32xf32>
    %cst_148 = arith.constant 5.000000e-01 : f32
    %307 = vector.broadcast %cst_148 : f32 to vector<2x32xf32>
    %308 = arith.mulf %307, %306 : vector<2x32xf32>
    %309 = vector.extract_strided_slice %303 {offsets = [0, 32], sizes = [2, 32], strides = [1, 1]} : vector<2x128xf32> to vector<2x32xf32>
    %cst_149 = arith.constant 1.000000e+00 : f32
    %310 = vector.broadcast %cst_149 : f32 to vector<2x32xf32>
    %311 = arith.addf %310, %309 : vector<2x32xf32>
    %cst_150 = arith.constant 5.000000e-01 : f32
    %312 = vector.broadcast %cst_150 : f32 to vector<2x32xf32>
    %313 = arith.mulf %312, %311 : vector<2x32xf32>
    %314 = vector.extract_strided_slice %303 {offsets = [0, 64], sizes = [2, 32], strides = [1, 1]} : vector<2x128xf32> to vector<2x32xf32>
    %315 = vector.extract_strided_slice %303 {offsets = [0, 96], sizes = [2, 32], strides = [1, 1]} : vector<2x128xf32> to vector<2x32xf32>
    %cst_151 = arith.constant 1.000000e+00 : f32
    %316 = vector.broadcast %cst_151 : f32 to vector<2x32xf32>
    %317 = arith.addf %316, %315 : vector<2x32xf32>
    %cst_152 = arith.constant 5.000000e-01 : f32
    %318 = vector.broadcast %cst_152 : f32 to vector<2x32xf32>
    %319 = arith.mulf %318, %317 : vector<2x32xf32>
    %320 = arith.mulf %313, %264 : vector<2x32xf32>
    %321 = arith.mulf %308, %314 : vector<2x32xf32>
    %322 = arith.addf %320, %321 : vector<2x32xf32>
    %323 = math.tanh %322 : vector<2x32xf32>
    %324 = arith.mulf %319, %323 : vector<2x32xf32>
    %c0_153 = arith.constant 0 : index
    %c0_154 = arith.constant 0 : index
    %325 = vector.load %arg5[%c0_153, %c0_154] : memref<32x128xf32, #tpu.memory_space<vmem>>, vector<32x128xf32>
    %c0_155 = arith.constant 0 : index
    %c0_156 = arith.constant 0 : index
    %326 = vector.load %arg6[%c0_155, %c0_156] : memref<32x128xf32, #tpu.memory_space<vmem>>, vector<32x128xf32>
    %c0_157 = arith.constant 0 : index
    %c0_158 = arith.constant 0 : index
    %327 = vector.load %arg7[%c0_157, %c0_158] : memref<1x128xf32, #tpu.memory_space<vmem>>, vector<1x128xf32>
    %cst_159 = arith.constant dense<0.000000e+00> : vector<2x128xf32>
    %328 = tpu.matmul %324, %325, %cst_159 {dimension_numbers = #tpu.dot_dimension_numbers<[1], [0], [0], [1], [0, 0, 1, 1], [], []>} : vector<2x32xf32>, vector<32x128xf32>, vector<2x128xf32> -> vector<2x128xf32>
    %cst_160 = arith.constant dense<0.000000e+00> : vector<2x128xf32>
    %329 = tpu.matmul %296, %326, %cst_160 {dimension_numbers = #tpu.dot_dimension_numbers<[1], [0], [0], [1], [0, 0, 1, 1], [], []>} : vector<2x32xf32>, vector<32x128xf32>, vector<2x128xf32> -> vector<2x128xf32>
    %330 = arith.addf %328, %329 : vector<2x128xf32>
    %331 = vector.broadcast %327 : vector<1x128xf32> to vector<2x128xf32>
    %332 = arith.addf %330, %331 : vector<2x128xf32>
    %333 = math.tanh %332 : vector<2x128xf32>
    %334 = vector.extract_strided_slice %333 {offsets = [0, 0], sizes = [2, 32], strides = [1, 1]} : vector<2x128xf32> to vector<2x32xf32>
    %cst_161 = arith.constant 1.000000e+00 : f32
    %335 = vector.broadcast %cst_161 : f32 to vector<2x32xf32>
    %336 = arith.addf %335, %334 : vector<2x32xf32>
    %cst_162 = arith.constant 5.000000e-01 : f32
    %337 = vector.broadcast %cst_162 : f32 to vector<2x32xf32>
    %338 = arith.mulf %337, %336 : vector<2x32xf32>
    %339 = vector.extract_strided_slice %333 {offsets = [0, 32], sizes = [2, 32], strides = [1, 1]} : vector<2x128xf32> to vector<2x32xf32>
    %cst_163 = arith.constant 1.000000e+00 : f32
    %340 = vector.broadcast %cst_163 : f32 to vector<2x32xf32>
    %341 = arith.addf %340, %339 : vector<2x32xf32>
    %cst_164 = arith.constant 5.000000e-01 : f32
    %342 = vector.broadcast %cst_164 : f32 to vector<2x32xf32>
    %343 = arith.mulf %342, %341 : vector<2x32xf32>
    %344 = vector.extract_strided_slice %333 {offsets = [0, 64], sizes = [2, 32], strides = [1, 1]} : vector<2x128xf32> to vector<2x32xf32>
    %345 = vector.extract_strided_slice %333 {offsets = [0, 96], sizes = [2, 32], strides = [1, 1]} : vector<2x128xf32> to vector<2x32xf32>
    %cst_165 = arith.constant 1.000000e+00 : f32
    %346 = vector.broadcast %cst_165 : f32 to vector<2x32xf32>
    %347 = arith.addf %346, %345 : vector<2x32xf32>
    %cst_166 = arith.constant 5.000000e-01 : f32
    %348 = vector.broadcast %cst_166 : f32 to vector<2x32xf32>
    %349 = arith.mulf %348, %347 : vector<2x32xf32>
    %350 = arith.mulf %343, %294 : vector<2x32xf32>
    %351 = arith.mulf %338, %344 : vector<2x32xf32>
    %352 = arith.addf %350, %351 : vector<2x32xf32>
    %353 = math.tanh %352 : vector<2x32xf32>
    %354 = arith.mulf %349, %353 : vector<2x32xf32>
    %c0_167 = arith.constant 0 : index
    %c160 = arith.constant 160 : index
    %355 = vector.load %arg8[%c0_167, %c160] : memref<2x256xf32, #tpu.memory_space<vmem>>, vector<2x32xf32>
    tpu.vector_store %arg8[%c0_167, %c160], %354 {strides = array<i32>} : memref<2x256xf32, #tpu.memory_space<vmem>>, vector<2x32xf32>,
    %c6 = arith.constant 6 : index
    %c0_168 = arith.constant 0 : index
    %c0_169 = arith.constant 0 : index
    %356 = vector.load %arg1[%c6, %c0_168, %c0_169] : memref<8x2x128xf32, #tpu.memory_space<vmem>>, vector<1x2x128xf32>
    %357 = vector.shape_cast %356 : vector<1x2x128xf32> to vector<2x128xf32>
    %c0_170 = arith.constant 0 : index
    %c0_171 = arith.constant 0 : index
    %358 = vector.load %arg4[%c0_170, %c0_171] : memref<32x128xf32, #tpu.memory_space<vmem>>, vector<32x128xf32>
    %cst_172 = arith.constant dense<0.000000e+00> : vector<2x128xf32>
    %359 = tpu.matmul %324, %358, %cst_172 {dimension_numbers = #tpu.dot_dimension_numbers<[1], [0], [0], [1], [0, 0, 1, 1], [], []>} : vector<2x32xf32>, vector<32x128xf32>, vector<2x128xf32> -> vector<2x128xf32>
    %360 = arith.addf %357, %359 : vector<2x128xf32>
    %361 = math.tanh %360 : vector<2x128xf32>
    %362 = vector.extract_strided_slice %361 {offsets = [0, 0], sizes = [2, 32], strides = [1, 1]} : vector<2x128xf32> to vector<2x32xf32>
    %cst_173 = arith.constant 1.000000e+00 : f32
    %363 = vector.broadcast %cst_173 : f32 to vector<2x32xf32>
    %364 = arith.addf %363, %362 : vector<2x32xf32>
    %cst_174 = arith.constant 5.000000e-01 : f32
    %365 = vector.broadcast %cst_174 : f32 to vector<2x32xf32>
    %366 = arith.mulf %365, %364 : vector<2x32xf32>
    %367 = vector.extract_strided_slice %361 {offsets = [0, 32], sizes = [2, 32], strides = [1, 1]} : vector<2x128xf32> to vector<2x32xf32>
    %cst_175 = arith.constant 1.000000e+00 : f32
    %368 = vector.broadcast %cst_175 : f32 to vector<2x32xf32>
    %369 = arith.addf %368, %367 : vector<2x32xf32>
    %cst_176 = arith.constant 5.000000e-01 : f32
    %370 = vector.broadcast %cst_176 : f32 to vector<2x32xf32>
    %371 = arith.mulf %370, %369 : vector<2x32xf32>
    %372 = vector.extract_strided_slice %361 {offsets = [0, 64], sizes = [2, 32], strides = [1, 1]} : vector<2x128xf32> to vector<2x32xf32>
    %373 = vector.extract_strided_slice %361 {offsets = [0, 96], sizes = [2, 32], strides = [1, 1]} : vector<2x128xf32> to vector<2x32xf32>
    %cst_177 = arith.constant 1.000000e+00 : f32
    %374 = vector.broadcast %cst_177 : f32 to vector<2x32xf32>
    %375 = arith.addf %374, %373 : vector<2x32xf32>
    %cst_178 = arith.constant 5.000000e-01 : f32
    %376 = vector.broadcast %cst_178 : f32 to vector<2x32xf32>
    %377 = arith.mulf %376, %375 : vector<2x32xf32>
    %378 = arith.mulf %371, %322 : vector<2x32xf32>
    %379 = arith.mulf %366, %372 : vector<2x32xf32>
    %380 = arith.addf %378, %379 : vector<2x32xf32>
    %381 = math.tanh %380 : vector<2x32xf32>
    %382 = arith.mulf %377, %381 : vector<2x32xf32>
    %c0_179 = arith.constant 0 : index
    %c0_180 = arith.constant 0 : index
    %383 = vector.load %arg5[%c0_179, %c0_180] : memref<32x128xf32, #tpu.memory_space<vmem>>, vector<32x128xf32>
    %c0_181 = arith.constant 0 : index
    %c0_182 = arith.constant 0 : index
    %384 = vector.load %arg6[%c0_181, %c0_182] : memref<32x128xf32, #tpu.memory_space<vmem>>, vector<32x128xf32>
    %c0_183 = arith.constant 0 : index
    %c0_184 = arith.constant 0 : index
    %385 = vector.load %arg7[%c0_183, %c0_184] : memref<1x128xf32, #tpu.memory_space<vmem>>, vector<1x128xf32>
    %cst_185 = arith.constant dense<0.000000e+00> : vector<2x128xf32>
    %386 = tpu.matmul %382, %383, %cst_185 {dimension_numbers = #tpu.dot_dimension_numbers<[1], [0], [0], [1], [0, 0, 1, 1], [], []>} : vector<2x32xf32>, vector<32x128xf32>, vector<2x128xf32> -> vector<2x128xf32>
    %cst_186 = arith.constant dense<0.000000e+00> : vector<2x128xf32>
    %387 = tpu.matmul %354, %384, %cst_186 {dimension_numbers = #tpu.dot_dimension_numbers<[1], [0], [0], [1], [0, 0, 1, 1], [], []>} : vector<2x32xf32>, vector<32x128xf32>, vector<2x128xf32> -> vector<2x128xf32>
    %388 = arith.addf %386, %387 : vector<2x128xf32>
    %389 = vector.broadcast %385 : vector<1x128xf32> to vector<2x128xf32>
    %390 = arith.addf %388, %389 : vector<2x128xf32>
    %391 = math.tanh %390 : vector<2x128xf32>
    %392 = vector.extract_strided_slice %391 {offsets = [0, 0], sizes = [2, 32], strides = [1, 1]} : vector<2x128xf32> to vector<2x32xf32>
    %cst_187 = arith.constant 1.000000e+00 : f32
    %393 = vector.broadcast %cst_187 : f32 to vector<2x32xf32>
    %394 = arith.addf %393, %392 : vector<2x32xf32>
    %cst_188 = arith.constant 5.000000e-01 : f32
    %395 = vector.broadcast %cst_188 : f32 to vector<2x32xf32>
    %396 = arith.mulf %395, %394 : vector<2x32xf32>
    %397 = vector.extract_strided_slice %391 {offsets = [0, 32], sizes = [2, 32], strides = [1, 1]} : vector<2x128xf32> to vector<2x32xf32>
    %cst_189 = arith.constant 1.000000e+00 : f32
    %398 = vector.broadcast %cst_189 : f32 to vector<2x32xf32>
    %399 = arith.addf %398, %397 : vector<2x32xf32>
    %cst_190 = arith.constant 5.000000e-01 : f32
    %400 = vector.broadcast %cst_190 : f32 to vector<2x32xf32>
    %401 = arith.mulf %400, %399 : vector<2x32xf32>
    %402 = vector.extract_strided_slice %391 {offsets = [0, 64], sizes = [2, 32], strides = [1, 1]} : vector<2x128xf32> to vector<2x32xf32>
    %403 = vector.extract_strided_slice %391 {offsets = [0, 96], sizes = [2, 32], strides = [1, 1]} : vector<2x128xf32> to vector<2x32xf32>
    %cst_191 = arith.constant 1.000000e+00 : f32
    %404 = vector.broadcast %cst_191 : f32 to vector<2x32xf32>
    %405 = arith.addf %404, %403 : vector<2x32xf32>
    %cst_192 = arith.constant 5.000000e-01 : f32
    %406 = vector.broadcast %cst_192 : f32 to vector<2x32xf32>
    %407 = arith.mulf %406, %405 : vector<2x32xf32>
    %408 = arith.mulf %401, %352 : vector<2x32xf32>
    %409 = arith.mulf %396, %402 : vector<2x32xf32>
    %410 = arith.addf %408, %409 : vector<2x32xf32>
    %411 = math.tanh %410 : vector<2x32xf32>
    %412 = arith.mulf %407, %411 : vector<2x32xf32>
    %c0_193 = arith.constant 0 : index
    %c192 = arith.constant 192 : index
    %413 = vector.load %arg8[%c0_193, %c192] : memref<2x256xf32, #tpu.memory_space<vmem>>, vector<2x32xf32>
    tpu.vector_store %arg8[%c0_193, %c192], %412 {strides = array<i32>} : memref<2x256xf32, #tpu.memory_space<vmem>>, vector<2x32xf32>,
    %c7 = arith.constant 7 : index
    %c0_194 = arith.constant 0 : index
    %c0_195 = arith.constant 0 : index
    %414 = vector.load %arg1[%c7, %c0_194, %c0_195] : memref<8x2x128xf32, #tpu.memory_space<vmem>>, vector<1x2x128xf32>
    %415 = vector.shape_cast %414 : vector<1x2x128xf32> to vector<2x128xf32>
    %c0_196 = arith.constant 0 : index
    %c0_197 = arith.constant 0 : index
    %416 = vector.load %arg4[%c0_196, %c0_197] : memref<32x128xf32, #tpu.memory_space<vmem>>, vector<32x128xf32>
    %cst_198 = arith.constant dense<0.000000e+00> : vector<2x128xf32>
    %417 = tpu.matmul %382, %416, %cst_198 {dimension_numbers = #tpu.dot_dimension_numbers<[1], [0], [0], [1], [0, 0, 1, 1], [], []>} : vector<2x32xf32>, vector<32x128xf32>, vector<2x128xf32> -> vector<2x128xf32>
    %418 = arith.addf %415, %417 : vector<2x128xf32>
    %419 = math.tanh %418 : vector<2x128xf32>
    %420 = vector.extract_strided_slice %419 {offsets = [0, 0], sizes = [2, 32], strides = [1, 1]} : vector<2x128xf32> to vector<2x32xf32>
    %cst_199 = arith.constant 1.000000e+00 : f32
    %421 = vector.broadcast %cst_199 : f32 to vector<2x32xf32>
    %422 = arith.addf %421, %420 : vector<2x32xf32>
    %cst_200 = arith.constant 5.000000e-01 : f32
    %423 = vector.broadcast %cst_200 : f32 to vector<2x32xf32>
    %424 = arith.mulf %423, %422 : vector<2x32xf32>
    %425 = vector.extract_strided_slice %419 {offsets = [0, 32], sizes = [2, 32], strides = [1, 1]} : vector<2x128xf32> to vector<2x32xf32>
    %cst_201 = arith.constant 1.000000e+00 : f32
    %426 = vector.broadcast %cst_201 : f32 to vector<2x32xf32>
    %427 = arith.addf %426, %425 : vector<2x32xf32>
    %cst_202 = arith.constant 5.000000e-01 : f32
    %428 = vector.broadcast %cst_202 : f32 to vector<2x32xf32>
    %429 = arith.mulf %428, %427 : vector<2x32xf32>
    %430 = vector.extract_strided_slice %419 {offsets = [0, 64], sizes = [2, 32], strides = [1, 1]} : vector<2x128xf32> to vector<2x32xf32>
    %431 = vector.extract_strided_slice %419 {offsets = [0, 96], sizes = [2, 32], strides = [1, 1]} : vector<2x128xf32> to vector<2x32xf32>
    %cst_203 = arith.constant 1.000000e+00 : f32
    %432 = vector.broadcast %cst_203 : f32 to vector<2x32xf32>
    %433 = arith.addf %432, %431 : vector<2x32xf32>
    %cst_204 = arith.constant 5.000000e-01 : f32
    %434 = vector.broadcast %cst_204 : f32 to vector<2x32xf32>
    %435 = arith.mulf %434, %433 : vector<2x32xf32>
    %436 = arith.mulf %429, %380 : vector<2x32xf32>
    %437 = arith.mulf %424, %430 : vector<2x32xf32>
    %438 = arith.addf %436, %437 : vector<2x32xf32>
    %439 = math.tanh %438 : vector<2x32xf32>
    %440 = arith.mulf %435, %439 : vector<2x32xf32>
    %c0_205 = arith.constant 0 : index
    %c0_206 = arith.constant 0 : index
    %441 = vector.load %arg5[%c0_205, %c0_206] : memref<32x128xf32, #tpu.memory_space<vmem>>, vector<32x128xf32>
    %c0_207 = arith.constant 0 : index
    %c0_208 = arith.constant 0 : index
    %442 = vector.load %arg6[%c0_207, %c0_208] : memref<32x128xf32, #tpu.memory_space<vmem>>, vector<32x128xf32>
    %c0_209 = arith.constant 0 : index
    %c0_210 = arith.constant 0 : index
    %443 = vector.load %arg7[%c0_209, %c0_210] : memref<1x128xf32, #tpu.memory_space<vmem>>, vector<1x128xf32>
    %cst_211 = arith.constant dense<0.000000e+00> : vector<2x128xf32>
    %444 = tpu.matmul %440, %441, %cst_211 {dimension_numbers = #tpu.dot_dimension_numbers<[1], [0], [0], [1], [0, 0, 1, 1], [], []>} : vector<2x32xf32>, vector<32x128xf32>, vector<2x128xf32> -> vector<2x128xf32>
    %cst_212 = arith.constant dense<0.000000e+00> : vector<2x128xf32>
    %445 = tpu.matmul %412, %442, %cst_212 {dimension_numbers = #tpu.dot_dimension_numbers<[1], [0], [0], [1], [0, 0, 1, 1], [], []>} : vector<2x32xf32>, vector<32x128xf32>, vector<2x128xf32> -> vector<2x128xf32>
    %446 = arith.addf %444, %445 : vector<2x128xf32>
    %447 = vector.broadcast %443 : vector<1x128xf32> to vector<2x128xf32>
    %448 = arith.addf %446, %447 : vector<2x128xf32>
    %449 = math.tanh %448 : vector<2x128xf32>
    %450 = vector.extract_strided_slice %449 {offsets = [0, 0], sizes = [2, 32], strides = [1, 1]} : vector<2x128xf32> to vector<2x32xf32>
    %cst_213 = arith.constant 1.000000e+00 : f32
    %451 = vector.broadcast %cst_213 : f32 to vector<2x32xf32>
    %452 = arith.addf %451, %450 : vector<2x32xf32>
    %cst_214 = arith.constant 5.000000e-01 : f32
    %453 = vector.broadcast %cst_214 : f32 to vector<2x32xf32>
    %454 = arith.mulf %453, %452 : vector<2x32xf32>
    %455 = vector.extract_strided_slice %449 {offsets = [0, 32], sizes = [2, 32], strides = [1, 1]} : vector<2x128xf32> to vector<2x32xf32>
    %cst_215 = arith.constant 1.000000e+00 : f32
    %456 = vector.broadcast %cst_215 : f32 to vector<2x32xf32>
    %457 = arith.addf %456, %455 : vector<2x32xf32>
    %cst_216 = arith.constant 5.000000e-01 : f32
    %458 = vector.broadcast %cst_216 : f32 to vector<2x32xf32>
    %459 = arith.mulf %458, %457 : vector<2x32xf32>
    %460 = vector.extract_strided_slice %449 {offsets = [0, 64], sizes = [2, 32], strides = [1, 1]} : vector<2x128xf32> to vector<2x32xf32>
    %461 = vector.extract_strided_slice %449 {offsets = [0, 96], sizes = [2, 32], strides = [1, 1]} : vector<2x128xf32> to vector<2x32xf32>
    %cst_217 = arith.constant 1.000000e+00 : f32
    %462 = vector.broadcast %cst_217 : f32 to vector<2x32xf32>
    %463 = arith.addf %462, %461 : vector<2x32xf32>
    %cst_218 = arith.constant 5.000000e-01 : f32
    %464 = vector.broadcast %cst_218 : f32 to vector<2x32xf32>
    %465 = arith.mulf %464, %463 : vector<2x32xf32>
    %466 = arith.mulf %459, %410 : vector<2x32xf32>
    %467 = arith.mulf %454, %460 : vector<2x32xf32>
    %468 = arith.addf %466, %467 : vector<2x32xf32>
    %469 = math.tanh %468 : vector<2x32xf32>
    %470 = arith.mulf %465, %469 : vector<2x32xf32>
    %c0_219 = arith.constant 0 : index
    %c224 = arith.constant 224 : index
    %471 = vector.load %arg8[%c0_219, %c224] : memref<2x256xf32, #tpu.memory_space<vmem>>, vector<2x32xf32>
    tpu.vector_store %arg8[%c0_219, %c224], %470 {strides = array<i32>} : memref<2x256xf32, #tpu.memory_space<vmem>>, vector<2x32xf32>,
    return
  }
  func.func @transform_0(%arg0: i32) -> (i32, i32, i32) {
    %c0_i32 = arith.constant 0 : i32
    %c0_i32_0 = arith.constant 0 : i32
    %c0_i32_1 = arith.constant 0 : i32
    return %c0_i32, %arg0, %c0_i32_0 : i32, i32, i32
  }
  func.func @transform_1(%arg0: i32) -> (i32, i32, i32) {
    %c0_i32 = arith.constant 0 : i32
    %c0_i32_0 = arith.constant 0 : i32
    %c0_i32_1 = arith.constant 0 : i32
    return %c0_i32, %arg0, %c0_i32_0 : i32, i32, i32
  }
  func.func @transform_2(%arg0: i32) -> (i32, i32, i32) {
    %c0_i32 = arith.constant 0 : i32
    %c0_i32_0 = arith.constant 0 : i32
    %c0_i32_1 = arith.constant 0 : i32
    return %c0_i32, %arg0, %c0_i32_0 : i32, i32, i32
  }
  func.func @transform_3(%arg0: i32) -> (i32, i32) {
    %c0_i32 = arith.constant 0 : i32
    %c0_i32_0 = arith.constant 0 : i32
    %c0_i32_1 = arith.constant 0 : i32
    return %c0_i32, %c0_i32_0 : i32, i32
  }
  func.func @transform_4(%arg0: i32) -> (i32, i32) {
    %c0_i32 = arith.constant 0 : i32
    %c0_i32_0 = arith.constant 0 : i32
    %c0_i32_1 = arith.constant 0 : i32
    return %c0_i32, %c0_i32_0 : i32, i32
  }
  func.func @transform_5(%arg0: i32) -> (i32, i32) {
    %c0_i32 = arith.constant 0 : i32
    %c0_i32_0 = arith.constant 0 : i32
    %c0_i32_1 = arith.constant 0 : i32
    return %c0_i32, %c0_i32_0 : i32, i32
  }
  func.func @transform_6(%arg0: i32) -> (i32, i32) {
    %c0_i32 = arith.constant 0 : i32
    %c0_i32_0 = arith.constant 0 : i32
    %c0_i32_1 = arith.constant 0 : i32
    return %c0_i32, %c0_i32_0 : i32, i32
  }
  func.func @transform_7(%arg0: i32) -> (i32, i32) {
    %c0_i32 = arith.constant 0 : i32
    %c0_i32_0 = arith.constant 0 : i32
    return %arg0, %c0_i32 : i32, i32
  }
}

</mosaic_0001>

<bundles_post_ra>
// kernel: tpu_custom_call.1
= control target key start
LH: loop header
LB: loop body
LE: loop exit
PB: predicated region body
PF: predicated region fallthrough
CT: control target
= control target key end

     0   :  { %12 = vsyncpa [#allocation3], 0  ;;  %s1856_s0 = inlined_call_operand.hbm [shape: f32[8,2,128], index: 0, kind: input, shape index: {}]   ;;  %s1857_s1 = inlined_call_operand.hbm [shape: f32[2,2,32], index: 1, kind: input, shape index: {}]   ;;  %s1858_s2 = inlined_call_operand.hbm [shape: f32[2,2,32], index: 2, kind: input, shape index: {}]   ;;  %s1859_s3 = inlined_call_operand.hbm [shape: f32[32,128], index: 3, kind: input, shape index: {}]   ;;  %s1860_s4 = inlined_call_operand.hbm [shape: f32[32,128], index: 4, kind: input, shape index: {}]   ;;  %s1861_s5 = inlined_call_operand.hbm [shape: f32[32,128], index: 5, kind: input, shape index: {}]   ;;  %s1862_s6 = inlined_call_operand.vmem [shape: f32[1,128], index: 6, kind: input, shape index: {}]   ;;  %s1863_s7 = inlined_call_operand.hbm [shape: f32[2,256], index: 7, kind: output, shape index: {}]  }
   0x1   :  { %13 = vsyncpa [#allocation6], 0 }
   0x2   :  { %14 = vsyncpa [#allocation9], 0 }
   0x3   :  { %15 = vsyncpa [#allocation12], 0 }
   0x4   :  { %16 = vsyncpa [#allocation4], 0  ;;  %s34_s26 = sshll.u32 %s1857_s1, 4  ;;  %s1509_s27 = smov [#allocation5]   ;;  %s35_s26 = int_to_ptr.hbm [resolvable:$true] %s34_s26 }
   0x5   :  { %s36_s28 = sshll.u32 %s1509_s27, 4  ;;  %s60_s8 = sshll.u32 %s1859_s3, 4  ;;  %s37_s28 = int_to_ptr.vmem [resolvable:$true] %s36_s28  ;;  %s61_s8 = int_to_ptr.hbm [resolvable:$true] %s60_s8 }
   0x6   :  { %s1510_s9 = smov 32   ;;  %s1511_s10 = smov 2  }
   0x7   :  { %42 = dma.hbm_to_vmem [thread:$0]  %s35_s26, 64, %s37_s28, [#allocation6], %s1510_s9, %s1510_s9, %s1511_s10  }
   0x8   :  { %s1512_s11 = smov [#allocation8]   ;;  %s1513_s13 = smov 128  }
   0x9   :  { %s62_s12 = sshll.u32 %s1512_s11, 4  ;;  %s1514_s14 = smov 8   ;;  %s63_s12 = int_to_ptr.vmem [resolvable:$true] %s62_s12 }
   0xa   :  { %68 = dma.hbm_to_vmem [thread:$0]  %s61_s8, 512, %s63_s12, [#allocation9], %s1513_s13, %s1513_s13, %s1514_s14  }
   0xb   :  { %s21_s16 = sshll.u32 %s1856_s0, 4  ;;  %s1515_s17 = smov [#allocation2]   ;;  %s22_s16 = int_to_ptr.hbm [resolvable:$true] %s21_s16 }
   0xc   :  { %s23_s18 = sshll.u32 %s1515_s17, 4  ;;  %s47_s20 = sshll.u32 %s1858_s2, 4  ;;  %s24_s18 = int_to_ptr.vmem [resolvable:$true] %s23_s18  ;;  %s48_s20 = int_to_ptr.hbm [resolvable:$true] %s47_s20 }
   0xd   :  { %29 = dma.hbm_to_vmem [thread:$0]  %s22_s16, 256, %s24_s18, [#allocation3], %s1510_s9, %s1510_s9, %s1511_s10  }
   0xe   :  { %s1516_s21 = smov [#allocation7]   ;;  %s73_s25 = sshll.u32 %s1860_s4, 4  ;;  %s74_s25 = int_to_ptr.hbm [resolvable:$true] %s73_s25 }
   0xf   :  { %s49_s22 = sshll.u32 %s1516_s21, 4  ;;  %s86_s27 = sshll.u32 %s1861_s5, 4  ;;  %s50_s22 = int_to_ptr.vmem [resolvable:$true] %s49_s22  ;;  %s87_s27 = int_to_ptr.hbm [resolvable:$true] %s86_s27 }
  0x10   :  { %55 = dma.hbm_to_vmem [thread:$0]  %s48_s20, 64, %s50_s22, [#allocation6], %s1510_s9, %s1510_s9, %s1511_s10  }
  0x11   :  { %s1517_s2 = smov [#allocation10]   ;;  %s1518_s29 = smov [#allocation11]  }
  0x12   :  { %s75_s28 = sshll.u32 %s1517_s2, 4  ;;  %s88_s30 = sshll.u32 %s1518_s29, 4  ;;  %s76_s28 = int_to_ptr.vmem [resolvable:$true] %s75_s28  ;;  %s89_s30 = int_to_ptr.vmem [resolvable:$true] %s88_s30 }
  0x13   :  { %81 = dma.hbm_to_vmem [thread:$0]  %s74_s25, 512, %s76_s28, [#allocation9], %s1513_s13, %s1513_s13, %s1514_s14  }
  0x14   :  { %94 = dma.hbm_to_vmem [thread:$0]  %s87_s27, 512, %s89_s30, [#allocation12], %s1513_s13, %s1513_s13, %s1514_s14  }
  0x15   :  { %1499 = dma.done.wait [#allocation3], 256  }
  0x16   :  { %1500 = vsyncadd [#allocation3], 4294967040 }
  0x17   :  { %1501 = dma.done.wait [#allocation6], 128  }
  0x18   :  { %1502 = vsyncadd [#allocation6], 4294967168 }
  0x19   :  { %1503 = dma.done.wait [#allocation9], 1024  }
  0x1a   :  { %1504 = vsyncadd [#allocation9], 4294966272 }
  0x1b   :  { %1505 = dma.done.wait [#allocation12], 512  }
  0x1c   :  { %1506 = vsyncadd [#allocation12], 4294966784  ;;  %v1586_v0 = vld [vmem:[#allocation8 + $0x18] sm:$0xff]  ;;  %v1588_v1 = vld [vmem:[#allocation8 + $0x10] sm:$0xff]  ;;  %vm132_vm0 = vcmask 261120   ;;  %s1519_s4 = smov 64  }
  0x1d   :  { %148 = vmatpush.msra.mxu0 %v1586_v0  ;;  %v1591_v2 = vld [vmem:[#allocation8 + $0x8] sm:$0xff]  ;;  %290 = vmatpush.msra.mxu3 %v1586_v0  ;;  %v1596_v3 = vld [vmem:[#allocation8] sm:$0xff]  ;;  %v121_v4 = vld [vmem:[#allocation5] sm:$0x3]  ;;  %vm270_vm1 = vcmask 254976   ;;  %s1520_s20 = smov 96  }
  0x1e   :  { %v127_v5 = vld [vmem:[#allocation2] sm:$0x3]  ;;  %v124_v9 = vld [vmem:[#allocation7] sm:$0x3]  ;;  %v1612_v20 = vld [vmem:[#allocation10 + $0x10] sm:$0xff]  ;;  %vm403_vm2 = vcmask 517376  }
  0x1f   :  { %149 = vmatpush.msra.mxu0 %v1588_v1  ;;  %291 = vmatpush.msra.mxu3 %v1588_v1  ;;  %v1610_v19 = vld [vmem:[#allocation10 + $0x18] sm:$0xff]  ;;  %v1617_v22 = vld [vmem:[#allocation10 + $0x8] sm:$0xff]  ;;  %v1623_v23 = vld [vmem:[#allocation10] sm:$0xff]  ;;  %vm538_vm3 = vcmask 779776   ;;  %vm669_vm4 = vcmask 1042176   ;;  %s1209_s0 = sshll.u32 %s1863_s7, 4  ;;  %s1210_s0 = int_to_ptr.hbm [resolvable:$true] %s1209_s0 }
  0x20   :  { %230 = vmatpush.msra.mxu2 %v1610_v19  ;;  %v1615_v21 = vld [vmem:[#allocation11 + $0x18] sm:$0xff]  ;;  %v1632_v26 = vld [vmem:[#allocation11 + $0x10] sm:$0xff]  ;;  %v1634_v27 = vld [vmem:[#allocation11 + $0x8] sm:$0xff] }
  0x21   :  { %150 = vmatpush.msra.mxu0 %v1591_v2  ;;  %292 = vmatpush.msra.mxu3 %v1591_v2  ;;  %v126_v28 = vld [vmem:[#allocation7 + $0x2] sm:$0x3]  ;;  %v1638_v29 = vld [vmem:[#allocation11] sm:$0xff]  ;;  %v123_v30 = vld [vmem:[#allocation5 + $0x2] sm:$0x3] }
  0x22   :  { %205 = vmatpush.msra.mxu1 %v1615_v21  ;;  %231 = vmatpush.msra.mxu2 %v1612_v20  ;;  %v273_v33 = vld [vmem:[#allocation2 + $0x2] sm:$0x3]  ;;  %v1259_v34 = vld [vmem:[%s1862_s6] ss:$0 sm:$0xff] }
  0x23   :  { %151 = vmatpush.msra.mxu0 %v1596_v3  ;;  %293 = vmatpush.msra.mxu3 %v1596_v3 }
  0x24   :  { %1222 = vmatmul.msk.f32.vlgmr.msra.gmra.mxu0 %vm132_vm0, %v121_v4  ;;  %232 = vmatpush.msra.mxu2 %v1617_v22 }
  0x25   :  { %342 = vmatpush.msrb.mxu0 %v1615_v21  ;;  %477 = vmatpush.msrb.mxu3 %v1615_v21 }
  0x26   :  { %233 = vmatpush.msra.mxu2 %v1623_v23  ;;  %206 = vmatpush.msra.mxu1 %v1632_v26 }
  0x27   :  { %343 = vmatpush.msrb.mxu0 %v1632_v26  ;;  %478 = vmatpush.msrb.mxu3 %v1632_v26 }
  0x28   :  { %423 = vmatpush.msrb.mxu2 %v1586_v0  ;;  %207 = vmatpush.msra.mxu1 %v1634_v27 }
  0x29   :  { %344 = vmatpush.msrb.mxu0 %v1634_v27  ;;  %479 = vmatpush.msrb.mxu3 %v1634_v27 }
  0x2a   :  { %424 = vmatpush.msrb.mxu2 %v1588_v1  ;;  %208 = vmatpush.msra.mxu1 %v1638_v29 }
  0x2b   :  { %345 = vmatpush.msrb.mxu0 %v1638_v29  ;;  %1223 = vmatmul.msk.f32.vlgmr.msra.gmra.mxu1 %vm132_vm0, %v123_v30 }
  0x2c   :  { %425 = vmatpush.msrb.mxu2 %v1591_v2  ;;  %480 = vmatpush.msrb.mxu3 %v1638_v29 }
  0x2d   :  { %367 = vmatpush.msrb.mxu1 %v1610_v19  ;;  %502 = vmatpush.msra.mxu0 %v1610_v19 }
  0x2e   :  { %426 = vmatpush.msrb.mxu2 %v1596_v3 }
  0x2f   :  { %368 = vmatpush.msrb.mxu1 %v1612_v20  ;;  %503 = vmatpush.msra.mxu0 %v1612_v20 }
  0x31   :  { %369 = vmatpush.msrb.mxu1 %v1617_v22  ;;  %504 = vmatpush.msra.mxu0 %v1617_v22 }
  0x33   :  { %370 = vmatpush.msrb.mxu1 %v1623_v23  ;;  %505 = vmatpush.msra.mxu0 %v1623_v23 }
  0x35   :  { %558 = vmatpush.msra.mxu1 %v1586_v0 }
  0x37   :  { %559 = vmatpush.msra.mxu1 %v1588_v1 }
  0x39   :  { %560 = vmatpush.msra.mxu1 %v1591_v2 }
  0x3b   :  { %561 = vmatpush.msra.mxu1 %v1596_v3 }
  0xa1   :  { %v153_v6 = vpop.f32.mrf.mxu0 }
  0xa2   :  { %v156_v7 = vadd.f32 %v153_v6, %v127_v5  ;;  %v1260_v5 = vld [vmem:[%s1862_s6] ss:$0 sm:$0xff] }
  0xa4   :  { %1267 = vtanh.f32 %v156_v7 }
  0xa8   :  { %v210_v32 = vpop.f32.mrf.mxu1 }
  0xaa   :  { %v1268_v8 = vpop.eup %1267 }
  0xab   :  { %166 = vrot.lane.b32.xlu0 %v1268_v8, %s1519_s4  ;;  %v158_v10 = vadd.f32 1.0, %v1268_v8 }
  0xad   :  { %v159_v11 = vmul.f32 0.5, %v158_v10  ;;  %v406_v10 = vld [vmem:[#allocation2 + $0x4] sm:$0x3] }
  0xb3   :  { %161 = vrot.lane.b32.xlu0 %v124_v9, %s1510_s9 }
 0x11d   :  { %v167_v12 = vpop.permute.xlu0 %166 }
 0x11e   :  { %v169_v13 = vmul.f32 %v167_v12, %v159_v11 }
 0x120   :  { %171 = vrot.lane.b32.xlu1 %v169_v13, %s1510_s9 }
 0x125   :  { %v162_v14 = vpop.permute.xlu0 %161 }
 0x126   :  { %v164_v15 = vmul.f32 %v162_v14, %v159_v11 }
 0x192   :  { %v172_v16 = vpop.permute.xlu1 %171 }
 0x193   :  { %v1606_v17 = vadd.f32 %v172_v16, %v164_v15 }
 0x195   :  { %1269 = vtanh.f32 %v1606_v17 }
 0x19b   :  { %v1270_v18 = vpop.eup %1269 }
 0x19c   :  { %177 = vrot.lane.b32.xlu1 %v1270_v18, %s1519_s4 }
 0x1a4   :  { %246 = vrot.lane.b32.xlu1 %v126_v28, %s1510_s9 }
 0x20e   :  { %v178_v24 = vpop.permute.xlu1 %177 }
 0x20f   :  { %v180_v25 = vmul.f32 %v178_v24, %v159_v11 }
 0x211   :  { %214 = vrot.lane.b32.xlu2 %v180_v25, %s1510_s9 }
 0x216   :  { %v247_v50 = vpop.permute.xlu1 %246 }
 0x26b   :  { %v215_v31 = vpop.permute.xlu2 %214 }
 0x26c   :  { %1224 = vmatmul.msk.f32.vlgmr.msra.gmra.mxu2 %vm132_vm0, %v215_v31  ;;  %1225 = vmatmul.msk.f32.vlgmr.msra.gmra.mxu3 %vm132_vm0, %v215_v31 }
 0x26d   :  { %637 = vmatpush.msra.mxu3 %v1610_v19  ;;  %612 = vmatpush.msra.mxu2 %v1615_v21 }
 0x26f   :  { %638 = vmatpush.msra.mxu3 %v1612_v20  ;;  %613 = vmatpush.msra.mxu2 %v1632_v26 }
 0x271   :  { %639 = vmatpush.msra.mxu3 %v1617_v22  ;;  %614 = vmatpush.msra.mxu2 %v1634_v27 }
 0x273   :  { %640 = vmatpush.msra.mxu3 %v1623_v23  ;;  %615 = vmatpush.msra.mxu2 %v1638_v29 }
 0x2ef   :  { %v235_v35 = vpop.f32.mrf.mxu2  ;;  %v295_v36 = vpop.f32.mrf.mxu3 }
 0x2f0   :  { %v236_v37 = vadd.f32 %v235_v35, %v210_v32  ;;  %v298_v38 = vadd.f32 %v295_v36, %v273_v33 }
 0x2f2   :  { %v241_v39 = vadd.f32 %v1259_v34, %v236_v37  ;;  %1271 = vtanh.f32 %v298_v38 }
 0x2f4   :  { %1273 = vtanh.f32 %v241_v39 }
 0x2f8   :  { %v1272_v40 = vpop.eup %1271 }
 0x2f9   :  { %304 = vrot.lane.b32.xlu0 %v1272_v40, %s1519_s4  ;;  %v300_v46 = vadd.f32 1.0, %v1272_v40 }
 0x2fa   :  { %v1274_v41 = vpop.eup %1273 }
 0x2fb   :  { %251 = vrot.lane.b32.xlu2 %v1274_v41, %s1519_s4  ;;  %v243_v42 = vadd.f32 1.0, %v1274_v41  ;;  %v301_v47 = vmul.f32 0.5, %v300_v46 }
 0x2fd   :  { %v244_v43 = vmul.f32 0.5, %v243_v42  ;;  %v302_v55 = vmul.f32 %v301_v47, %v1606_v17 }
 0x2ff   :  { %v249_v51 = vmul.f32 %v247_v50, %v244_v43 }
 0x355   :  { %v252_v44 = vpop.permute.xlu2 %251 }
 0x356   :  { %v254_v45 = vmul.f32 %v252_v44, %v244_v43 }
 0x358   :  { %256 = vrot.lane.b32.xlu2 %v254_v45, %s1510_s9  ;;  %v541_v45 = vld [vmem:[#allocation2 + $0x6] sm:$0x3] }
 0x36b   :  { %v305_v48 = vpop.permute.xlu0 %304 }
 0x36c   :  { %v307_v49 = vmul.f32 %v305_v48, %v301_v47 }
 0x36e   :  { %309 = vrot.lane.b32.xlu0 %v307_v49, %s1510_s9 }
 0x3b2   :  { %v257_v52 = vpop.permute.xlu2 %256 }
 0x3b3   :  { %v259_v53 = vadd.f32 %v257_v52, %v249_v51 }
 0x3b5   :  { %1275 = vtanh.f32 %v259_v53 }
 0x3bb   :  { %v1276_v54 = vpop.eup %1275 }
 0x3bc   :  { %262 = vrot.lane.b32.xlu1 %v1276_v54, %s1519_s4 }
 0x3e0   :  { %v310_v56 = vpop.permute.xlu0 %309 }
 0x3e1   :  { %v312_v57 = vadd.f32 %v310_v56, %v302_v55 }
 0x3e3   :  { %1277 = vtanh.f32 %v312_v57 }
 0x3e9   :  { %v1278_v58 = vpop.eup %1277 }
 0x3ea   :  { %315 = vrot.lane.b32.xlu2 %v1278_v58, %s1519_s4 }
 0x42e   :  { %v263_v59 = vpop.permute.xlu1 %262 }
 0x42f   :  { %v265_v60 = vmul.f32 %v263_v59, %v244_v43 }
 0x431   :  { %267 = vrot.lane.b32.xlu0 %v265_v60, %s1510_s9 }
 0x444   :  { %v316_v61 = vpop.permute.xlu2 %315 }
 0x445   :  { %v318_v62 = vmul.f32 %v316_v61, %v301_v47  ;;  %v1261_v47 = vld [vmem:[%s1862_s6] ss:$0 sm:$0xff] }
 0x447   :  { %351 = vrot.lane.b32.xlu1 %v318_v62, %s1510_s9 }
 0x4a3   :  { %v268_v63 = vpop.permute.xlu0 %267 }
 0x4a4   :  { %271 = vst.msk [vmem:[#allocation13] sm:$0x3] %vm270_vm1, %v268_v63  ;;  %1226 = vmatmul.msk.f32.vlgmr.msrb.gmra.mxu0 %vm132_vm0, %v268_v63 }
 0x4a5   :  { %689 = vmatpush.msrb.mxu0 %v1586_v0 }
 0x4a7   :  { %690 = vmatpush.msrb.mxu0 %v1588_v1 }
 0x4a9   :  { %691 = vmatpush.msrb.mxu0 %v1591_v2 }
 0x4ab   :  { %692 = vmatpush.msrb.mxu0 %v1596_v3 }
 0x4b9   :  { %v352_v4 = vpop.permute.xlu1 %351 }
 0x4ba   :  { %1227 = vmatmul.msk.f32.vlgmr.msrb.gmra.mxu1 %vm132_vm0, %v352_v4  ;;  %1228 = vmatmul.msk.f32.vlgmr.msrb.gmra.mxu2 %vm132_vm0, %v352_v4 }
 0x4bb   :  { %769 = vmatpush.msrb.mxu2 %v1610_v19  ;;  %744 = vmatpush.msrb.mxu1 %v1615_v21 }
 0x4bd   :  { %770 = vmatpush.msrb.mxu2 %v1612_v20  ;;  %745 = vmatpush.msrb.mxu1 %v1632_v26 }
 0x4bf   :  { %771 = vmatpush.msrb.mxu2 %v1617_v22  ;;  %746 = vmatpush.msrb.mxu1 %v1634_v27 }
 0x4c1   :  { %772 = vmatpush.msrb.mxu2 %v1623_v23  ;;  %747 = vmatpush.msrb.mxu1 %v1638_v29 }
 0x521   :  { %v347_v6 = vpop.f32.mrf.mxu0 }
 0x537   :  { %v372_v7 = vpop.f32.mrf.mxu1 }
 0x538   :  { %v373_v8 = vadd.f32 %v372_v7, %v347_v6 }
 0x53a   :  { %v378_v9 = vadd.f32 %v1260_v5, %v373_v8 }
 0x53c   :  { %1279 = vtanh.f32 %v378_v9 }
 0x53d   :  { %v428_v11 = vpop.f32.mrf.mxu2 }
 0x53e   :  { %v431_v12 = vadd.f32 %v428_v11, %v406_v10 }
 0x540   :  { %1281 = vtanh.f32 %v431_v12 }
 0x542   :  { %v1280_v13 = vpop.eup %1279 }
 0x543   :  { %384 = vrot.lane.b32.xlu2 %v1280_v13, %s1519_s4  ;;  %v380_v15 = vadd.f32 1.0, %v1280_v13 }
 0x545   :  { %v381_v16 = vmul.f32 0.5, %v380_v15 }
 0x546   :  { %v1282_v14 = vpop.eup %1281 }
 0x547   :  { %437 = vrot.lane.b32.xlu0 %v1282_v14, %s1519_s4  ;;  %v433_v24 = vadd.f32 1.0, %v1282_v14  ;;  %v382_v31 = vmul.f32 %v381_v16, %v259_v53 }
 0x549   :  { %v434_v25 = vmul.f32 0.5, %v433_v24 }
 0x54b   :  { %v435_v34 = vmul.f32 %v434_v25, %v312_v57 }
 0x59d   :  { %v385_v17 = vpop.permute.xlu2 %384 }
 0x59e   :  { %v387_v18 = vmul.f32 %v385_v17, %v381_v16  ;;  %v672_v17 = vld [vmem:[#allocation2 + $0x8] sm:$0x3] }
 0x5a0   :  { %389 = vrot.lane.b32.xlu1 %v387_v18, %s1510_s9 }
 0x5b9   :  { %v438_v28 = vpop.permute.xlu0 %437 }
 0x5ba   :  { %v440_v30 = vmul.f32 %v438_v28, %v434_v25  ;;  %v1262_v28 = vld [vmem:[%s1862_s6] ss:$0 sm:$0xff] }
 0x5bc   :  { %442 = vrot.lane.b32.xlu2 %v440_v30, %s1510_s9 }
 0x612   :  { %v390_v32 = vpop.permute.xlu1 %389 }
 0x613   :  { %v1706_v33 = vadd.f32 %v390_v32, %v382_v31 }
 0x615   :  { %1283 = vtanh.f32 %v1706_v33 }
 0x616   :  { %v443_v35 = vpop.permute.xlu2 %442 }
 0x617   :  { %v445_v36 = vadd.f32 %v443_v35, %v435_v34 }
 0x619   :  { %1285 = vtanh.f32 %v445_v36 }
 0x61b   :  { %v1284_v37 = vpop.eup %1283 }
 0x61c   :  { %395 = vrot.lane.b32.xlu0 %v1284_v37, %s1519_s4 }
 0x61f   :  { %v1286_v38 = vpop.eup %1285 }
 0x620   :  { %448 = vrot.lane.b32.xlu1 %v1286_v38, %s1519_s4 }
 0x68e   :  { %v396_v39 = vpop.permute.xlu0 %395 }
 0x68f   :  { %v1711_v40 = vmul.f32 %v396_v39, %v381_v16 }
 0x691   :  { %461 = vrot.lane.b32.xlu2 %v1711_v40, %s1510_s9 }
 0x692   :  { %v449_v41 = vpop.permute.xlu1 %448 }
 0x693   :  { %v451_v42 = vmul.f32 %v449_v41, %v434_v25 }
 0x695   :  { %486 = vrot.lane.b32.xlu0 %v451_v42, %s1510_s9 }
 0x6eb   :  { %v462_v43 = vpop.permute.xlu2 %461 }
 0x6ec   :  { %1229 = vmatmul.msk.f32.vlgmr.msrb.gmra.mxu3 %vm132_vm0, %v462_v43 }
 0x6ed   :  { %824 = vmatpush.msrb.mxu3 %v1586_v0 }
 0x6ef   :  { %825 = vmatpush.msrb.mxu3 %v1588_v1 }
 0x6f1   :  { %826 = vmatpush.msrb.mxu3 %v1591_v2 }
 0x6f3   :  { %827 = vmatpush.msrb.mxu3 %v1596_v3 }
 0x707   :  { %v487_v44 = vpop.permute.xlu0 %486 }
 0x708   :  { %1230 = vmatmul.msk.f32.vlgmr.msra.gmra.mxu0 %vm132_vm0, %v487_v44  ;;  %1231 = vmatmul.msk.f32.vlgmr.msra.gmra.mxu1 %vm132_vm0, %v487_v44 }
 0x709   :  { %901 = vmatpush.msra.mxu1 %v1610_v19  ;;  %876 = vmatpush.msra.mxu0 %v1615_v21 }
 0x70b   :  { %902 = vmatpush.msra.mxu1 %v1612_v20  ;;  %877 = vmatpush.msra.mxu0 %v1632_v26 }
 0x70d   :  { %903 = vmatpush.msra.mxu1 %v1617_v22  ;;  %878 = vmatpush.msra.mxu0 %v1634_v27 }
 0x70f   :  { %904 = vmatpush.msra.mxu1 %v1623_v23  ;;  %879 = vmatpush.msra.mxu0 %v1638_v29 }
 0x76f   :  { %v482_v46 = vpop.f32.mrf.mxu3 }
 0x785   :  { %v507_v48 = vpop.f32.mrf.mxu0  ;;  %v563_v49 = vpop.f32.mrf.mxu1 }
 0x786   :  { %v508_v50 = vadd.f32 %v507_v48, %v482_v46  ;;  %v566_v51 = vadd.f32 %v563_v49, %v541_v45 }
 0x788   :  { %v513_v52 = vadd.f32 %v1261_v47, %v508_v50  ;;  %1287 = vtanh.f32 %v566_v51 }
 0x78a   :  { %1289 = vtanh.f32 %v513_v52 }
 0x78e   :  { %v1288_v53 = vpop.eup %1287 }
 0x78f   :  { %572 = vrot.lane.b32.xlu2 %v1288_v53, %s1519_s4  ;;  %v568_v55 = vadd.f32 1.0, %v1288_v53 }
 0x790   :  { %v1290_v54 = vpop.eup %1289 }
 0x791   :  { %519 = vrot.lane.b32.xlu1 %v1290_v54, %s1519_s4  ;;  %v569_v56 = vmul.f32 0.5, %v568_v55  ;;  %v515_v59 = vadd.f32 1.0, %v1290_v54 }
 0x793   :  { %v516_v60 = vmul.f32 0.5, %v515_v59  ;;  %v570_v63 = vmul.f32 %v569_v56, %v445_v36 }
 0x795   :  { %v517_v7 = vmul.f32 %v516_v60, %v1706_v33 }
 0x7e9   :  { %v573_v57 = vpop.permute.xlu2 %572 }
 0x7ea   :  { %v575_v58 = vmul.f32 %v573_v57, %v569_v56 }
 0x7ec   :  { %577 = vrot.lane.b32.xlu1 %v575_v58, %s1510_s9 }
 0x803   :  { %v520_v61 = vpop.permute.xlu1 %519 }
 0x804   :  { %v522_v62 = vmul.f32 %v520_v61, %v516_v60 }
 0x806   :  { %524 = vrot.lane.b32.xlu0 %v522_v62, %s1510_s9 }
 0x85e   :  { %v578_v4 = vpop.permute.xlu1 %577 }
 0x85f   :  { %v580_v5 = vadd.f32 %v578_v4, %v570_v63 }
 0x861   :  { %1291 = vtanh.f32 %v580_v5 }
 0x867   :  { %v1292_v6 = vpop.eup %1291 }
 0x868   :  { %583 = vrot.lane.b32.xlu0 %v1292_v6, %s1519_s4 }
 0x878   :  { %v525_v8 = vpop.permute.xlu0 %524 }
 0x879   :  { %v527_v9 = vadd.f32 %v525_v8, %v517_v7 }
 0x87b   :  { %1293 = vtanh.f32 %v527_v9 }
 0x881   :  { %v1294_v10 = vpop.eup %1293 }
 0x882   :  { %530 = vrot.lane.b32.xlu2 %v1294_v10, %s1519_s4 }
 0x8da   :  { %v584_v11 = vpop.permute.xlu0 %583 }
 0x8db   :  { %v586_v12 = vmul.f32 %v584_v11, %v569_v56 }
 0x8dc   :  { %v531_v13 = vpop.permute.xlu2 %530 }
 0x8dd   :  { %v1741_v14 = vmul.f32 %v531_v13, %v516_v60  ;;  %621 = vrot.lane.b32.xlu2 %v586_v12, %s1510_s9 }
 0x8df   :  { %596 = vrot.lane.b32.xlu1 %v1741_v14, %s1510_s9 }
 0x937   :  { %v622_v15 = vpop.permute.xlu2 %621 }
 0x938   :  { %1233 = vmatmul.msk.f32.vlgmr.msra.gmra.mxu3 %vm132_vm0, %v622_v15  ;;  %1234 = vmatmul.msk.f32.vlgmr.msrb.gmra.mxu0 %vm132_vm0, %v622_v15 }
 0x939   :  { %1035 = vmatpush.msrb.mxu0 %v1610_v19  ;;  %1010 = vmatpush.msra.mxu3 %v1615_v21 }
 0x93b   :  { %1036 = vmatpush.msrb.mxu0 %v1612_v20  ;;  %1011 = vmatpush.msra.mxu3 %v1632_v26 }
 0x93d   :  { %1037 = vmatpush.msrb.mxu0 %v1617_v22  ;;  %1012 = vmatpush.msra.mxu3 %v1634_v27 }
 0x93f   :  { %1038 = vmatpush.msrb.mxu0 %v1623_v23  ;;  %1013 = vmatpush.msra.mxu3 %v1638_v29 }
 0x951   :  { %v597_v16 = vpop.permute.xlu1 %596 }
 0x952   :  { %1232 = vmatmul.msk.f32.vlgmr.msra.gmra.mxu2 %vm132_vm0, %v597_v16 }
 0x953   :  { %956 = vmatpush.msra.mxu2 %v1586_v0 }
 0x955   :  { %957 = vmatpush.msra.mxu2 %v1588_v1 }
 0x957   :  { %958 = vmatpush.msra.mxu2 %v1591_v2 }
 0x959   :  { %959 = vmatpush.msra.mxu2 %v1596_v3 }
 0x9b5   :  { %v694_v18 = vpop.f32.mrf.mxu0 }
 0x9b6   :  { %v697_v24 = vadd.f32 %v694_v18, %v672_v17 }
 0x9b8   :  { %1295 = vtanh.f32 %v697_v24  ;;  %v939_v24 = vld [vmem:[#allocation2 + $0xc] sm:$0x3] }
 0x9bb   :  { %v642_v30 = vpop.f32.mrf.mxu3 }
 0x9be   :  { %v1296_v25 = vpop.eup %1295 }
 0x9bf   :  { %703 = vrot.lane.b32.xlu0 %v1296_v25, %s1519_s4  ;;  %v699_v35 = vadd.f32 1.0, %v1296_v25 }
 0x9c1   :  { %v700_v36 = vmul.f32 0.5, %v699_v35 }
 0x9c3   :  { %v701_v44 = vmul.f32 %v700_v36, %v580_v5 }
 0x9d5   :  { %v617_v31 = vpop.f32.mrf.mxu2 }
 0x9d6   :  { %v643_v32 = vadd.f32 %v642_v30, %v617_v31 }
 0x9d8   :  { %v648_v33 = vadd.f32 %v1262_v28, %v643_v32  ;;  %v1264_v28 = vld [vmem:[%s1862_s6] ss:$0 sm:$0xff] }
 0x9da   :  { %1297 = vtanh.f32 %v648_v33 }
 0x9e0   :  { %v1298_v34 = vpop.eup %1297 }
 0x9e1   :  { %654 = vrot.lane.b32.xlu1 %v1298_v34, %s1519_s4  ;;  %v650_v39 = vadd.f32 1.0, %v1298_v34 }
 0x9e3   :  { %v651_v41 = vmul.f32 0.5, %v650_v39 }
 0x9e5   :  { %v652_v48 = vmul.f32 %v651_v41, %v527_v9 }
 0xa31   :  { %v704_v37 = vpop.permute.xlu0 %703 }
 0xa32   :  { %v706_v38 = vmul.f32 %v704_v37, %v700_v36 }
 0xa34   :  { %708 = vrot.lane.b32.xlu2 %v706_v38, %s1510_s9 }
 0xa53   :  { %v655_v42 = vpop.permute.xlu1 %654 }
 0xa54   :  { %v657_v43 = vmul.f32 %v655_v42, %v651_v41 }
 0xa56   :  { %659 = vrot.lane.b32.xlu0 %v657_v43, %s1510_s9 }
 0xa8e   :  { %v709_v45 = vpop.permute.xlu2 %708 }
 0xa8f   :  { %v711_v46 = vadd.f32 %v709_v45, %v701_v44 }
 0xa91   :  { %1299 = vtanh.f32 %v711_v46 }
 0xa97   :  { %v1300_v47 = vpop.eup %1299 }
 0xa98   :  { %714 = vrot.lane.b32.xlu1 %v1300_v47, %s1519_s4 }
 0xac8   :  { %v660_v49 = vpop.permute.xlu0 %659 }
 0xac9   :  { %v662_v50 = vadd.f32 %v660_v49, %v652_v48 }
 0xacb   :  { %1301 = vtanh.f32 %v662_v50 }
 0xad1   :  { %v1302_v51 = vpop.eup %1301 }
 0xad2   :  { %665 = vrot.lane.b32.xlu2 %v1302_v51, %s1519_s4 }
 0xb0a   :  { %v715_v52 = vpop.permute.xlu1 %714 }
 0xb0b   :  { %v717_v53 = vmul.f32 %v715_v52, %v700_v36 }
 0xb0d   :  { %753 = vrot.lane.b32.xlu0 %v717_v53, %s1510_s9 }
 0xb2c   :  { %v666_v54 = vpop.permute.xlu2 %665 }
 0xb2d   :  { %v1771_v55 = vmul.f32 %v666_v54, %v651_v41 }
 0xb2f   :  { %728 = vrot.lane.b32.xlu1 %v1771_v55, %s1510_s9 }
 0xb7f   :  { %v754_v56 = vpop.permute.xlu0 %753 }
 0xb80   :  { %1236 = vmatmul.msk.f32.vlgmr.msrb.gmra.mxu2 %vm132_vm0, %v754_v56  ;;  %1237 = vmatmul.msk.f32.vlgmr.msrb.gmra.mxu3 %vm132_vm0, %v754_v56 }
 0xb81   :  { %1169 = vmatpush.msrb.mxu3 %v1610_v19  ;;  %1144 = vmatpush.msrb.mxu2 %v1615_v21  ;;  %v807_v19 = vld [vmem:[#allocation2 + $0xa] sm:$0x3] }
 0xb83   :  { %1170 = vmatpush.msrb.mxu3 %v1612_v20  ;;  %1145 = vmatpush.msrb.mxu2 %v1632_v26 }
 0xb85   :  { %1171 = vmatpush.msrb.mxu3 %v1617_v22  ;;  %1146 = vmatpush.msrb.mxu2 %v1634_v27 }
 0xb87   :  { %1172 = vmatpush.msrb.mxu3 %v1623_v23  ;;  %1147 = vmatpush.msrb.mxu2 %v1638_v29  ;;  %v1263_v23 = vld [vmem:[%s1862_s6] ss:$0 sm:$0xff] }
 0xba1   :  { %v729_v57 = vpop.permute.xlu1 %728 }
 0xba2   :  { %1235 = vmatmul.msk.f32.vlgmr.msrb.gmra.mxu1 %vm132_vm0, %v729_v57 }
 0xba3   :  { %1090 = vmatpush.msrb.mxu1 %v1586_v0 }
 0xba5   :  { %1091 = vmatpush.msrb.mxu1 %v1588_v1 }
 0xba7   :  { %1092 = vmatpush.msrb.mxu1 %v1591_v2 }
 0xba9   :  { %1093 = vmatpush.msrb.mxu1 %v1596_v3 }
 0xc03   :  { %v829_v20 = vpop.f32.mrf.mxu3  ;;  %v774_v26 = vpop.f32.mrf.mxu2 }
 0xc04   :  { %v832_v21 = vadd.f32 %v829_v20, %v807_v19 }
 0xc06   :  { %1303 = vtanh.f32 %v832_v21 }
 0xc0c   :  { %v1304_v22 = vpop.eup %1303 }
 0xc0d   :  { %838 = vrot.lane.b32.xlu0 %v1304_v22, %s1519_s4  ;;  %v834_v2 = vadd.f32 1.0, %v1304_v22  ;;  %v1073_v22 = vld [vmem:[#allocation2 + $0xe] sm:$0x3] }
 0xc0f   :  { %v835_v3 = vmul.f32 0.5, %v834_v2 }
 0xc11   :  { %v836_v4 = vmul.f32 %v835_v3, %v711_v46 }
 0xc1f   :  { %v749_v27 = vpop.f32.mrf.mxu1 }
 0xc20   :  { %v775_v0 = vadd.f32 %v774_v26, %v749_v27 }
 0xc22   :  { %v780_v29 = vadd.f32 %v1263_v23, %v775_v0  ;;  %v1265_v0 = vld [vmem:[%s1862_s6] ss:$0 sm:$0xff] }
 0xc24   :  { %1305 = vtanh.f32 %v780_v29 }
 0xc2a   :  { %v1306_v1 = vpop.eup %1305 }
 0xc2b   :  { %786 = vrot.lane.b32.xlu2 %v1306_v1, %s1519_s4  ;;  %v782_v60 = vadd.f32 1.0, %v1306_v1 }
 0xc2d   :  { %v783_v61 = vmul.f32 0.5, %v782_v60 }
 0xc2f   :  { %v784_v8 = vmul.f32 %v783_v61, %v662_v50 }
 0xc7f   :  { %v839_v58 = vpop.permute.xlu0 %838 }
 0xc80   :  { %v841_v59 = vmul.f32 %v839_v58, %v835_v3 }
 0xc82   :  { %843 = vrot.lane.b32.xlu2 %v841_v59, %s1510_s9 }
 0xc85   :  { %v787_v62 = vpop.permute.xlu2 %786 }
 0xc86   :  { %v789_v63 = vmul.f32 %v787_v62, %v783_v61 }
 0xc88   :  { %791 = vrot.lane.b32.xlu1 %v789_v63, %s1510_s9 }
 0xcdc   :  { %v844_v5 = vpop.permute.xlu2 %843 }
 0xcdd   :  { %v846_v6 = vadd.f32 %v844_v5, %v836_v4 }
 0xcdf   :  { %1307 = vtanh.f32 %v846_v6 }
 0xce5   :  { %v1308_v7 = vpop.eup %1307 }
 0xce6   :  { %849 = vrot.lane.b32.xlu1 %v1308_v7, %s1519_s4 }
 0xcfa   :  { %v792_v9 = vpop.permute.xlu1 %791 }
 0xcfb   :  { %v794_v10 = vadd.f32 %v792_v9, %v784_v8 }
 0xcfd   :  { %1309 = vtanh.f32 %v794_v10 }
 0xd03   :  { %v1310_v11 = vpop.eup %1309 }
 0xd04   :  { %797 = vrot.lane.b32.xlu0 %v1310_v11, %s1519_s4 }
 0xd58   :  { %v850_v12 = vpop.permute.xlu1 %849 }
 0xd59   :  { %v852_v13 = vmul.f32 %v850_v12, %v835_v3 }
 0xd5b   :  { %885 = vrot.lane.b32.xlu0 %v852_v13, %s1510_s9 }
 0xd76   :  { %v798_v15 = vpop.permute.xlu0 %797 }
 0xd77   :  { %v800_v16 = vmul.f32 %v798_v15, %v783_v61 }
 0xd79   :  { %802 = vrot.lane.b32.xlu2 %v800_v16, %s1510_s9 }
 0xdcd   :  { %v886_v17 = vpop.permute.xlu0 %885 }
 0xdce   :  { %1239 = vmatmul.msk.f32.vlgmr.msra.gmra.mxu1 %vm132_vm0, %v886_v17  ;;  %1240 = vmatmul.msk.f32.vlgmr.msra.gmra.mxu2 %vm132_vm0, %v886_v17 }
 0xdd3   :  { %v803_v18 = vpop.permute.xlu2 %802 }
 0xdd4   :  { %805 = vst.msk [vmem:[#allocation13 + $0x2] sm:$0x3] %vm270_vm1, %v803_v18  ;;  %1238 = vmatmul.msk.f32.vlgmr.msra.gmra.mxu0 %vm132_vm0, %v803_v18 }
 0xe4b   :  { %v906_v25 = vpop.f32.mrf.mxu1 }
 0xe51   :  { %v881_v30 = vpop.f32.mrf.mxu0  ;;  %v961_v31 = vpop.f32.mrf.mxu2 }
 0xe52   :  { %v907_v32 = vadd.f32 %v906_v25, %v881_v30  ;;  %v964_v33 = vadd.f32 %v961_v31, %v939_v24 }
 0xe54   :  { %v912_v34 = vadd.f32 %v1264_v28, %v907_v32  ;;  %1311 = vtanh.f32 %v964_v33 }
 0xe56   :  { %1313 = vtanh.f32 %v912_v34 }
 0xe5a   :  { %v1312_v35 = vpop.eup %1311 }
 0xe5b   :  { %970 = vrot.lane.b32.xlu2 %v1312_v35, %s1519_s4  ;;  %v966_v37 = vadd.f32 1.0, %v1312_v35 }
 0xe5c   :  { %v1314_v36 = vpop.eup %1313 }
 0xe5d   :  { %918 = vrot.lane.b32.xlu1 %v1314_v36, %s1519_s4  ;;  %v967_v38 = vmul.f32 0.5, %v966_v37  ;;  %v914_v42 = vadd.f32 1.0, %v1314_v36 }
 0xe5f   :  { %v915_v43 = vmul.f32 0.5, %v914_v42  ;;  %v968_v46 = vmul.f32 %v967_v38, %v846_v6 }
 0xe61   :  { %v916_v50 = vmul.f32 %v915_v43, %v794_v10 }
 0xeb5   :  { %v971_v39 = vpop.permute.xlu2 %970 }
 0xeb6   :  { %v973_v41 = vmul.f32 %v971_v39, %v967_v38 }
 0xeb8   :  { %975 = vrot.lane.b32.xlu1 %v973_v41, %s1510_s9 }
 0xecf   :  { %v919_v44 = vpop.permute.xlu1 %918 }
 0xed0   :  { %v921_v45 = vmul.f32 %v919_v44, %v915_v43 }
 0xed2   :  { %923 = vrot.lane.b32.xlu0 %v921_v45, %s1510_s9 }
 0xf2a   :  { %v976_v47 = vpop.permute.xlu1 %975 }
 0xf2b   :  { %v978_v48 = vadd.f32 %v976_v47, %v968_v46 }
 0xf2d   :  { %1315 = vtanh.f32 %v978_v48 }
 0xf33   :  { %v1316_v49 = vpop.eup %1315 }
 0xf34   :  { %981 = vrot.lane.b32.xlu0 %v1316_v49, %s1519_s4 }
 0xf44   :  { %v924_v51 = vpop.permute.xlu0 %923 }
 0xf45   :  { %v926_v52 = vadd.f32 %v924_v51, %v916_v50 }
 0xf47   :  { %1317 = vtanh.f32 %v926_v52 }
 0xf4d   :  { %v1318_v53 = vpop.eup %1317 }
 0xf4e   :  { %929 = vrot.lane.b32.xlu2 %v1318_v53, %s1519_s4 }
 0xfa6   :  { %v982_v54 = vpop.permute.xlu0 %981 }
 0xfa7   :  { %v984_v56 = vmul.f32 %v982_v54, %v967_v38 }
 0xfa8   :  { %v930_v57 = vpop.permute.xlu2 %929 }
 0xfa9   :  { %v1814_v19 = vmul.f32 %v930_v57, %v915_v43  ;;  %1019 = vrot.lane.b32.xlu2 %v984_v56, %s1510_s9 }
 0xfab   :  { %994 = vrot.lane.b32.xlu1 %v1814_v19, %s1510_s9 }
0x1003   :  { %v1020_v20 = vpop.permute.xlu2 %1019 }
0x1004   :  { %1242 = vmatmul.msk.f32.vlgmr.msrb.gmra.mxu0 %vm132_vm0, %v1020_v20  ;;  %1243 = vmatmul.msk.f32.vlgmr.msrb.gmra.mxu1 %vm132_vm0, %v1020_v20 }
0x101d   :  { %v995_v21 = vpop.permute.xlu1 %994 }
0x101e   :  { %1241 = vmatmul.msk.f32.vlgmr.msra.gmra.mxu3 %vm132_vm0, %v995_v21 }
0x1081   :  { %v1095_v23 = vpop.f32.mrf.mxu1  ;;  %v1040_v29 = vpop.f32.mrf.mxu0 }
0x1082   :  { %v1098_v26 = vadd.f32 %v1095_v23, %v1073_v22 }
0x1084   :  { %1319 = vtanh.f32 %v1098_v26 }
0x108a   :  { %v1320_v27 = vpop.eup %1319 }
0x108b   :  { %1104 = vrot.lane.b32.xlu1 %v1320_v27, %s1519_s4  ;;  %v1100_v59 = vadd.f32 1.0, %v1320_v27 }
0x108d   :  { %v1101_v60 = vmul.f32 0.5, %v1100_v59 }
0x108f   :  { %v1102_v7 = vmul.f32 %v1101_v60, %v978_v48 }
0x10a1   :  { %v1015_v1 = vpop.f32.mrf.mxu3 }
0x10a2   :  { %v1041_v2 = vadd.f32 %v1040_v29, %v1015_v1 }
0x10a4   :  { %v1046_v3 = vadd.f32 %v1265_v0, %v1041_v2 }
0x10a6   :  { %1321 = vtanh.f32 %v1046_v3 }
0x10ac   :  { %v1322_v58 = vpop.eup %1321 }
0x10ad   :  { %1052 = vrot.lane.b32.xlu0 %v1322_v58, %s1519_s4  ;;  %v1048_v63 = vadd.f32 1.0, %v1322_v58 }
0x10af   :  { %v1049_v4 = vmul.f32 0.5, %v1048_v63 }
0x10b1   :  { %v1050_v11 = vmul.f32 %v1049_v4, %v926_v52 }
0x10fd   :  { %v1105_v61 = vpop.permute.xlu1 %1104 }
0x10fe   :  { %v1107_v62 = vmul.f32 %v1105_v61, %v1101_v60 }
0x1100   :  { %1109 = vrot.lane.b32.xlu0 %v1107_v62, %s1510_s9 }
0x111f   :  { %v1053_v5 = vpop.permute.xlu0 %1052 }
0x1120   :  { %v1055_v6 = vmul.f32 %v1053_v5, %v1049_v4 }
0x1122   :  { %1057 = vrot.lane.b32.xlu2 %v1055_v6, %s1510_s9 }
0x1172   :  { %v1110_v8 = vpop.permute.xlu0 %1109 }
0x1173   :  { %v1112_v9 = vadd.f32 %v1110_v8, %v1102_v7 }
0x1175   :  { %1323 = vtanh.f32 %v1112_v9 }
0x117b   :  { %v1324_v10 = vpop.eup %1323 }
0x117c   :  { %1115 = vrot.lane.b32.xlu2 %v1324_v10, %s1519_s4  ;;  %v1058_v12 = vpop.permute.xlu2 %1057 }
0x117d   :  { %v1060_v13 = vadd.f32 %v1058_v12, %v1050_v11 }
0x117f   :  { %1325 = vtanh.f32 %v1060_v13 }
0x1185   :  { %v1326_v15 = vpop.eup %1325 }
0x1186   :  { %1063 = vrot.lane.b32.xlu1 %v1326_v15, %s1519_s4 }
0x11d6   :  { %v1116_v16 = vpop.permute.xlu2 %1115 }
0x11d7   :  { %v1118_v17 = vmul.f32 %v1116_v16, %v1101_v60 }
0x11d9   :  { %1153 = vrot.lane.b32.xlu1 %v1118_v17, %s1510_s9 }
0x11e1   :  { %400 = vrot.lane.b32.xlu1 %v1711_v40, %s1519_s4 }
0x11e9   :  { %535 = vrot.lane.b32.xlu1 %v1741_v14, %s1520_s20  ;;  %v1266_v14 = vld [vmem:[%s1862_s6] ss:$0 sm:$0xff]  ;;  %s1521_s6 = smov [#allocation13]  }
0x11ea   :  { %s1207_s23 = sshll.u32 %s1521_s6, 4  ;;  %s1208_s23 = int_to_ptr.vmem [resolvable:$true] %s1207_s23 }
0x11f8   :  { %v1064_v18 = vpop.permute.xlu1 %1063 }
0x11f9   :  { %v1066_v24 = vmul.f32 %v1064_v18, %v1049_v4 }
0x11fb   :  { %1128 = vrot.lane.b32.xlu0 %v1066_v24, %s1510_s9 }
0x124b   :  { %v1154_v25 = vpop.permute.xlu1 %1153 }
0x124c   :  { %1245 = vmatmul.msk.f32.vlgmr.msrb.gmra.mxu3 %vm132_vm0, %v1154_v25 }
0x1253   :  { %v401_v28 = vpop.permute.xlu1 %400 }
0x1254   :  { %404 = vst.msk [vmem:[#allocation13] sm:$0x3] %vm403_vm2, %v401_v28 }
0x125b   :  { %v536_v30 = vpop.permute.xlu1 %535 }
0x125c   :  { %539 = vst.msk [vmem:[#allocation13] sm:$0x3] %vm538_vm3, %v536_v30 }
0x125d   :  { %670 = vst.msk [vmem:[#allocation13] sm:$0x3] %vm669_vm4, %v1771_v55 }
0x126d   :  { %v1129_v40 = vpop.permute.xlu0 %1128 }
0x126e   :  { %1244 = vmatmul.msk.f32.vlgmr.msrb.gmra.mxu2 %vm132_vm0, %v1129_v40 }
0x12cf   :  { %v1174_v31 = vpop.f32.mrf.mxu3 }
0x12f1   :  { %v1149_v32 = vpop.f32.mrf.mxu2 }
0x12f2   :  { %v1175_v33 = vadd.f32 %v1174_v31, %v1149_v32 }
0x12f4   :  { %v1180_v34 = vadd.f32 %v1266_v14, %v1175_v33 }
0x12f6   :  { %1327 = vtanh.f32 %v1180_v34 }
0x12fc   :  { %v1328_v35 = vpop.eup %1327 }
0x12fd   :  { %1186 = vrot.lane.b32.xlu2 %v1328_v35, %s1519_s4  ;;  %v1182_v55 = vadd.f32 1.0, %v1328_v35 }
0x12ff   :  { %v1183_v36 = vmul.f32 0.5, %v1182_v55 }
0x1301   :  { %v1184_v42 = vmul.f32 %v1183_v36, %v1060_v13 }
0x1305   :  { %934 = vrot.lane.b32.xlu2 %v1814_v19, %s1519_s4 }
0x130d   :  { %1068 = vrot.lane.b32.xlu2 %v1066_v24, %s1520_s20 }
0x1357   :  { %v1187_v37 = vpop.permute.xlu2 %1186 }
0x1358   :  { %v1189_v38 = vmul.f32 %v1187_v37, %v1183_v36 }
0x135a   :  { %1191 = vrot.lane.b32.xlu0 %v1189_v38, %s1510_s9 }
0x135f   :  { %v935_v39 = vpop.permute.xlu2 %934 }
0x1360   :  { %937 = vst.msk [vmem:[#allocation13 + $0x2] sm:$0x3] %vm403_vm2, %v935_v39 }
0x1367   :  { %v1069_v41 = vpop.permute.xlu2 %1068 }
0x1368   :  { %1071 = vst.msk [vmem:[#allocation13 + $0x2] sm:$0x3] %vm538_vm3, %v1069_v41 }
0x13cc   :  { %v1192_v43 = vpop.permute.xlu0 %1191 }
0x13cd   :  { %v1194_v44 = vadd.f32 %v1192_v43, %v1184_v42 }
0x13cf   :  { %1329 = vtanh.f32 %v1194_v44 }
0x13d5   :  { %v1330_v45 = vpop.eup %1329 }
0x13d6   :  { %1197 = vrot.lane.b32.xlu0 %v1330_v45, %s1519_s4 }
0x1448   :  { %v1198_v46 = vpop.permute.xlu0 %1197 }
0x1449   :  { %v1200_v47 = vmul.f32 %v1198_v46, %v1183_v36 }
0x144b   :  { %1201 = vst.msk [vmem:[#allocation13 + $0x2] sm:$0x3] %vm669_vm4, %v1200_v47 }
0x144c   :  { %1212 = dma.vmem_to_hbm [thread:$0]  %s1208_s23, 64, %s1210_s0, [#allocation4]  }
0x144d   :  { %1507 = dma.done.wait [#allocation4], 64  }
0x144e   :  { %1508 = vsyncadd [#allocation4], 4294967232 }
0x144f   :  { %1217 = vsyncpa [#allocation3], 1 }
0x1450   :  { %1218 = vsyncpa [#allocation6], 1 }
0x1451   :  { %1219 = vsyncpa [#allocation9], 1 }
0x1452   :  { %1220 = vsyncpa [#allocation12], 1 }
0x1453   :  { %1221 = vsyncpa [#allocation4], 1 }

</bundles_post_ra>
